<compile_context>
chip_gen: v5e
topology: v5e:2x2
jax: 0.10.0
libtpu: 0.0.40
codegen_flags: <defaults>
</compile_context>

<pallas_src>
import math
from functools import partial

import jax
import jax.numpy as jnp
from jax.experimental import pallas as pl
from jax.experimental.pallas import tpu as pltpu


def _round_up(v, m):
    return (v + m - 1) // m * m


def _layer_norm(x, gamma, beta, eps=1e-5):
    # one-pass variance: E[x^2] - mu^2 (one fewer cross-lane reduction per LN)
    mu = jnp.mean(x, axis=-1, keepdims=True)
    ex2 = jnp.mean(x * x, axis=-1, keepdims=True)
    var = jnp.maximum(ex2 - mu * mu, 0.0)
    inv = jax.lax.rsqrt(var + eps)          # EUP
    return (x - mu) * inv * gamma + beta


def _pick_vmem_limit():
    # Re-derived per generation: v7x has 64 MiB physical VMEM, v5e/v6e 128 MiB.
    # Leave ~8 MiB headroom for compiler-internal scratch.
    try:
        phys = pltpu.get_tpu_info().vmem_capacity_bytes
    except Exception:
        phys = 64 * 1024 * 1024
    return int(min(phys - 8 * 1024 * 1024, 110 * 1024 * 1024))


# --------------------------------------------------------------------------- #
# Kernel: one (batch_tile, layer) grid step
# --------------------------------------------------------------------------- #
def _dit_kernel(
    # per-batch-tile blocks (block index constant along the layer axis)
    h0_ref, ctx_ref, bias_ref,
    # per-layer blocks (streamed along the inner "arbitrary" grid axis)
    ln1g_ref, ln1b_ref,
    wq_ref, bq_ref, wkv_ref, bkv_ref, wo_ref, bo_ref,
    ln2g_ref, ln2b_ref,
    wf1_ref, bf1_ref, wf2_ref, bf2_ref,
    # constant (final) blocks
    lnfg_ref, lnfb_ref, wout_ref, bout_ref,
    # output
    out_ref,
    # scratch: activations carried across the layer axis
    h_ref,
    *, num_heads, num_layers,
):
    l = pl.program_id(1)
    f32, bf16 = jnp.float32, jnp.bfloat16

    Bb, Tp, H = h0_ref.shape
    Tcp = ctx_ref.shape[1]
    rows = Bb * Tp
    hd = H // num_heads

    @pl.when(l == 0)
    def _():
        h_ref[...] = h0_ref[...].reshape(rows, H)

    h = h_ref[...]                                   # (rows, H)   f32, carried
    ctx = ctx_ref[...].reshape(Bb * Tcp, -1)         # (Bb*Tcp, Dp) bf16
    bias = bias_ref[...]                             # (Bb, 1, Tcp) f32 additive mask

    # ---- cross-attention block: h = h + Wo(MHA(LN(h), ctx)) ----
    n1 = _layer_norm(h, ln1g_ref[0], ln1b_ref[0]).astype(bf16)
    # attention scale is pre-folded into wq / bq in the wrapper
    q = jnp.dot(n1, wq_ref[0], preferred_element_type=f32) + bq_ref[0]        # (rows, H)
    # fused K/V projection: one (Bb*Tcp, Dp) @ (Dp, 2H) matmul
    kv = jnp.dot(ctx, wkv_ref[0], preferred_element_type=f32) + bkv_ref[0]    # (Bb*Tcp, 2H)

    qb = q.astype(bf16).reshape(Bb, Tp, H)
    # NOTE: lane slices below are only vreg-aligned when H / head_dim are
    # multiples of 128 -- pick such sizes at production scale.
    kb = kv[:, :H].astype(bf16).reshape(Bb, Tcp, H)
    vb = kv[:, H:].astype(bf16).reshape(Bb, Tcp, H)

    head_outs = []
    for hh in range(num_heads):
        lo = hh * hd
        s = jnp.einsum("bqd,bkd->bqk", qb[:, :, lo:lo + hd], kb[:, :, lo:lo + hd],
                       preferred_element_type=f32) + bias                     # (Bb,Tp,Tcp)
        m = jnp.max(s, axis=-1, keepdims=True)
        p = jnp.exp(s - m)
        p = p * pl.reciprocal(jnp.sum(p, axis=-1, keepdims=True), approx=False)
        head_outs.append(
            jnp.einsum("bqk,bkd->bqd", p.astype(bf16), vb[:, :, lo:lo + hd],
                       preferred_element_type=f32))                           # (Bb,Tp,hd)

    # one full-depth output projection instead of num_heads tiny-K matmuls
    attn = jnp.concatenate(head_outs, axis=-1).reshape(rows, H).astype(bf16)
    h = h + jnp.dot(attn, wo_ref[0], preferred_element_type=f32) + bo_ref[0]

    # ---- feed-forward block: h = h + FF(LN(h)) ----
    n2 = _layer_norm(h, ln2g_ref[0], ln2b_ref[0]).astype(bf16)
    f = jnp.dot(n2, wf1_ref[0], preferred_element_type=f32) + bf1_ref[0]
    f = jax.nn.gelu(f, approximate=True).astype(bf16)        # tanh GELU -> EUP slot
    h = h + jnp.dot(f, wf2_ref[0], preferred_element_type=f32) + bf2_ref[0]

    h_ref[...] = h

    # ---- last layer: final norm + output projection (lane-dense store) ----
    @pl.when(l == num_layers - 1)
    def _():
        hn = _layer_norm(h, lnfg_ref[...], lnfb_ref[...]).astype(bf16)
        out = jnp.dot(hn, wout_ref[...], preferred_element_type=f32) + bout_ref[...]
        out_ref[...] = out.reshape(out_ref.shape).astype(out_ref.dtype)


# --------------------------------------------------------------------------- #
# Glue
# --------------------------------------------------------------------------- #
def sinusoidal_embedding(timesteps, dim):
    half = dim // 2
    scale = math.log(10000.0) / (half - 1)
    freqs = jnp.exp(jnp.arange(half, dtype=jnp.float32) * -scale)
    args = timesteps.astype(jnp.float32)[:, None] * freqs[None, :]
    return jnp.concatenate([jnp.sin(args), jnp.cos(args)], axis=-1)  # [B, dim]


def diffusion_transformer_forward(params, x, timesteps, toxic_embeddings, toxic_mask,
                                  *, num_heads, num_layers, num_batch_tiles=1):
    f32, bf16 = jnp.float32, jnp.bfloat16
    B, T, Din = x.shape
    Tc = toxic_embeddings.shape[1]
    H = params["wi"].shape[1]
    assert H % num_heads == 0
    assert B % num_batch_tiles == 0
    Bb = B // num_batch_tiles
    hd = H // num_heads
    scaling = hd ** (-0.5)

    # lane/sublane friendly padded sizes
    Tp = _round_up(T, 8)
    Tcp = _round_up(Tc, 128)
    Dp = _round_up(Din, 128)

    if toxic_mask is None:
        toxic_mask = jnp.ones((B, Tc), f32)

    # ---- hoisted to XLA: time-embedding MLP (M=1) + input projection ----
    tsin = sinusoidal_embedding(timesteps, H)
    t1 = jax.nn.gelu(tsin @ params["wt1"] + params["bt1"], approximate=False)
    temb = t1 @ params["wt2"] + params["bt2"]                       # [B, H]
    h0 = x @ params["wi"] + params["bi"] + temb[:, None, :]         # [B, T, H]
    h0 = jnp.pad(h0, ((0, 0), (0, Tp - T), (0, 0))).astype(f32)

    # context (bf16, feature dim padded) + additive mask bias (pad = masked)
    ctx = jnp.pad(toxic_embeddings,
                  ((0, 0), (0, Tcp - Tc), (0, Dp - Din))).astype(bf16)
    maskp = jnp.pad(toxic_mask.astype(f32), ((0, 0), (0, Tcp - Tc)))
    bias = jnp.where(maskp == 0, -1e9, 0.0).astype(f32).reshape(B, 1, Tcp)

    # per-layer weights: matmul weights -> bf16; biases / LN params -> [L,1,·] f32
    def as_w(w):
        return w.astype(bf16)

    def as_v(v):
        return v.astype(f32)[:, None, :]

    ln1g, ln1b = as_v(params["ln1g"]), as_v(params["ln1b"])
    wq = as_w(params["wq"] * scaling)            # attention scale folded into weight
    bq = as_v(params["bq"] * scaling)
    wk = jnp.pad(params["wk"], ((0, 0), (0, Dp - Din), (0, 0)))
    wv = jnp.pad(params["wv"], ((0, 0), (0, Dp - Din), (0, 0)))
    wkv = as_w(jnp.concatenate([wk, wv], axis=-1))                      # [L, Dp, 2H]
    bkv = as_v(jnp.concatenate([params["bk"], params["bv"]], axis=-1))  # [L, 1, 2H]
    wo, bo = as_w(params["wo"]), as_v(params["bo"])
    ln2g, ln2b = as_v(params["ln2g"]), as_v(params["ln2b"])
    wf1, bf1 = as_w(params["wf1"]), as_v(params["bf1"])
    wf2, bf2 = as_w(params["wf2"]), as_v(params["bf2"])

    lnfg = params["lnfg"].astype(f32)                                   # [1, H]
    lnfb = params["lnfb"].astype(f32)                                   # [1, H]
    wout = as_w(jnp.pad(params["wout"], ((0, 0), (0, Dp - Din))))       # [H, Dp]
    bout = jnp.pad(params["bout"], ((0, 0), (0, Dp - Din))).astype(f32)  # [1, Dp]

    layer_args = [ln1g, ln1b, wq, bq, wkv, bkv, wo, bo,
                  ln2g, ln2b, wf1, bf1, wf2, bf2]
    final_args = [lnfg, lnfb, wout, bout]

    def batch_spec(shape):
        nrest = len(shape) - 1
        return pl.BlockSpec((Bb,) + tuple(shape[1:]),
                            lambda bt, l: (bt,) + (0,) * nrest)

    def layer_spec(shape):
        nrest = len(shape) - 1
        return pl.BlockSpec((1,) + tuple(shape[1:]),
                            lambda bt, l: (l,) + (0,) * nrest)

    def const_spec(shape):
        nd = len(shape)
        return pl.BlockSpec(tuple(shape), lambda bt, l: (0,) * nd)

    in_specs = (
        [batch_spec(h0.shape), batch_spec(ctx.shape), batch_spec(bias.shape)]
        + [layer_spec(a.shape) for a in layer_args]
        + [const_spec(a.shape) for a in final_args]
    )

    kernel = partial(_dit_kernel, num_heads=num_heads, num_layers=num_layers)

    out_padded = pl.pallas_call(
        kernel,
        out_shape=jax.ShapeDtypeStruct((B, Tp, Dp), x.dtype),
        grid_spec=pltpu.PrefetchScalarGridSpec(
            num_scalar_prefetch=0,
            # layer axis innermost -> each layer's weights are streamed once
            grid=(num_batch_tiles, num_layers),
            in_specs=in_specs,
            out_specs=pl.BlockSpec((Bb, Tp, Dp), lambda bt, l: (bt, 0, 0)),
            scratch_shapes=[pltpu.VMEM((Bb * Tp, H), jnp.float32)],   # h carry
        ),
        compiler_params=pltpu.CompilerParams(
            dimension_semantics=("parallel", "arbitrary"),
            vmem_limit_bytes=_pick_vmem_limit(),
        ),
    )(h0, ctx, bias, *layer_args, *final_args)

    return out_padded[:, :T, :Din]


# --------------------------------------------------------------------------- #
# Deterministic parameter init (matches shapes of the PyTorch module)
# --------------------------------------------------------------------------- #
def init_params(key, input_dim, hidden_dim, num_layers):
    keys = iter(jax.random.split(key, 64))
    H = hidden_dim

    def linear(in_dim, out_dim):
        bound = 1.0 / math.sqrt(in_dim)
        w = jax.random.uniform(next(keys), (in_dim, out_dim), jnp.float32, -bound, bound)
        b = jax.random.uniform(next(keys), (1, out_dim), jnp.float32, -bound, bound)
        return w, b

    def stack_linear(in_dim, out_dim):
        ws, bs = zip(*[linear(in_dim, out_dim) for _ in range(num_layers)])
        return jnp.stack(ws), jnp.concatenate(bs, axis=0)

    p = {}
    p["wt1"], p["bt1"] = linear(H, 4 * H)
    p["wt2"], p["bt2"] = linear(4 * H, H)
    p["wi"], p["bi"] = linear(input_dim, H)
    p["ln1g"] = jnp.ones((num_layers, H), jnp.float32)
    p["ln1b"] = jnp.zeros((num_layers, H), jnp.float32)
    p["wq"], p["bq"] = stack_linear(H, H)
    p["wk"], p["bk"] = stack_linear(input_dim, H)
    p["wv"], p["bv"] = stack_linear(input_dim, H)
    p["wo"], p["bo"] = stack_linear(H, H)
    p["ln2g"] = jnp.ones((num_layers, H), jnp.float32)
    p["ln2b"] = jnp.zeros((num_layers, H), jnp.float32)
    p["wf1"], p["bf1"] = stack_linear(H, 4 * H)
    p["wf2"], p["bf2"] = stack_linear(4 * H, H)
    p["lnfg"] = jnp.ones((1, H), jnp.float32)
    p["lnfb"] = jnp.zeros((1, H), jnp.float32)
    p["wout"], p["bout"] = linear(H, input_dim)
    return p


# --------------------------------------------------------------------------- #
# Pure-JAX reference (mirrors the PyTorch forward, eval mode, f32 precision)
# --------------------------------------------------------------------------- #
def reference_forward(params, x, timesteps, ctx, mask, *, num_heads, num_layers):
    H = params["wi"].shape[1]
    hd = H // num_heads
    B, T, _ = x.shape
    Tc = ctx.shape[1]

    def ln(z, g, b):
        mu = jnp.mean(z, -1, keepdims=True)
        var = jnp.mean((z - mu) ** 2, -1, keepdims=True)
        return (z - mu) / jnp.sqrt(var + 1e-5) * g + b

    with jax.default_matmul_precision("highest"):
        tsin = sinusoidal_embedding(timesteps, H)
        t1 = jax.nn.gelu(tsin @ params["wt1"] + params["bt1"], approximate=False)
        t = t1 @ params["wt2"] + params["bt2"]
        h = x @ params["wi"] + params["bi"] + t[:, None, :]
        maskf = mask.astype(jnp.float32)

        for l in range(num_layers):
            n1 = ln(h, params["ln1g"][l], params["ln1b"][l])
            q = n1 @ params["wq"][l] + params["bq"][l]
            k = ctx @ params["wk"][l] + params["bk"][l]
            v = ctx @ params["wv"][l] + params["bv"][l]
            q = q.reshape(B, T, num_heads, hd).transpose(0, 2, 1, 3)
            k = k.reshape(B, Tc, num_heads, hd).transpose(0, 2, 1, 3)
            v = v.reshape(B, Tc, num_heads, hd).transpose(0, 2, 1, 3)
            dots = jnp.einsum("bhqd,bhkd->bhqk", q, k) * (hd ** -0.5)
            dots = jnp.where(maskf[:, None, None, :] == 0, -jnp.inf, dots)
            attn = jax.nn.softmax(dots, axis=-1)
            o = jnp.einsum("bhqk,bhkd->bhqd", attn, v).transpose(0, 2, 1, 3).reshape(B, T, H)
            h = h + o @ params["wo"][l] + params["bo"][l]
            n2 = ln(h, params["ln2g"][l], params["ln2b"][l])
            f = jax.nn.gelu(n2 @ params["wf1"][l] + params["bf1"][l], approximate=False)
            h = h + f @ params["wf2"][l] + params["bf2"][l]

        hn = ln(h, params["lnfg"], params["lnfb"])
        return hn @ params["wout"] + params["bout"]


# --------------------------------------------------------------------------- #
if __name__ == "__main__":
    B, T, Tc = 2, 8, 8
    input_dim, hidden_dim = 16, 32
    num_heads, num_layers = 4, 2

    key = jax.random.PRNGKey(0)
    kx, kc, kt, kp = jax.random.split(key, 4)

    x = jax.random.normal(kx, (B, T, input_dim), jnp.float32)
    toxic_embeddings = jax.random.normal(kc, (B, Tc, input_dim), jnp.float32)
    timesteps = jax.random.randint(kt, (B,), 0, 1000)
    lengths = jnp.array([Tc, Tc - 3])
    toxic_mask = (jnp.arange(Tc)[None, :] < lengths[:, None]).astype(jnp.float32)

    params = init_params(kp, input_dim, hidden_dim, num_layers)

    fwd = jax.jit(partial(diffusion_transformer_forward,
                          num_heads=num_heads, num_layers=num_layers,
                          num_batch_tiles=1))   # set >=2 on v7x for both TCs
    out = jax.block_until_ready(fwd(params, x, timesteps, toxic_embeddings, toxic_mask))

    ref = reference_forward(
        params, x, timesteps, toxic_embeddings, toxic_mask,
        num_heads=num_heads, num_layers=num_layers)

    assert out.shape == (B, T, input_dim)
    assert not bool(jnp.any(jnp.isnan(out)))
    # kernel uses bf16 MXU inputs (f32 accumulation) + tanh GELU,
    # reference runs at full f32 precision with exact GELU -> moderate tolerance
    max_diff = float(jnp.max(jnp.abs(out - ref)))
    assert max_diff < 7.5e-2, f"max abs diff {max_diff}"
    print("KERNEL_OK")
</pallas_src>

<mosaic_0001>
module attributes {stable_mosaic.version = 11 : i64} {
  func.func @_dit_kernel(%arg0: i32, %arg1: i32, %arg2: memref<2x8x32xf32, #tpu.memory_space<vmem>>, %arg3: memref<2x128x128xbf16, #tpu.memory_space<vmem>>, %arg4: memref<2x1x128xf32, #tpu.memory_space<vmem>>, %arg5: memref<1x1x32xf32, #tpu.memory_space<vmem>>, %arg6: memref<1x1x32xf32, #tpu.memory_space<vmem>>, %arg7: memref<1x32x32xbf16, #tpu.memory_space<vmem>>, %arg8: memref<1x1x32xf32, #tpu.memory_space<vmem>>, %arg9: memref<1x128x64xbf16, #tpu.memory_space<vmem>>, %arg10: memref<1x1x64xf32, #tpu.memory_space<vmem>>, %arg11: memref<1x32x32xbf16, #tpu.memory_space<vmem>>, %arg12: memref<1x1x32xf32, #tpu.memory_space<vmem>>, %arg13: memref<1x1x32xf32, #tpu.memory_space<vmem>>, %arg14: memref<1x1x32xf32, #tpu.memory_space<vmem>>, %arg15: memref<1x32x128xbf16, #tpu.memory_space<vmem>>, %arg16: memref<1x1x128xf32, #tpu.memory_space<vmem>>, %arg17: memref<1x128x32xbf16, #tpu.memory_space<vmem>>, %arg18: memref<1x1x32xf32, #tpu.memory_space<vmem>>, %arg19: memref<1x32xf32, #tpu.memory_space<vmem>>, %arg20: memref<1x32xf32, #tpu.memory_space<vmem>>, %arg21: memref<32x128xbf16, #tpu.memory_space<vmem>>, %arg22: memref<1x128xf32, #tpu.memory_space<vmem>>, %arg23: memref<2x8x128xf32, #tpu.memory_space<vmem>>, %arg24: memref<16x32xf32, #tpu.memory_space<vmem>>) attributes {dimension_semantics = [#tpu.dimension_semantics<parallel>, #tpu.dimension_semantics<arbitrary>], iteration_bounds = array<i64: 1, 2>, scalar_prefetch = 0 : i64, scratch_operands = 1 : i64, tpu.core_type = #tpu.core_type<tc>, window_params = [{transform_indices = @transform_0, window_bounds = array<i64: 2, 8, 32>}, {transform_indices = @transform_1, window_bounds = array<i64: 2, 128, 128>}, {transform_indices = @transform_2, window_bounds = array<i64: 2, 1, 128>}, {transform_indices = @transform_3, window_bounds = array<i64: 1, 1, 32>}, {transform_indices = @transform_4, window_bounds = array<i64: 1, 1, 32>}, {transform_indices = @transform_5, window_bounds = array<i64: 1, 32, 32>}, {transform_indices = @transform_6, window_bounds = array<i64: 1, 1, 32>}, {transform_indices = @transform_7, window_bounds = array<i64: 1, 128, 64>}, {transform_indices = @transform_8, window_bounds = array<i64: 1, 1, 64>}, {transform_indices = @transform_9, window_bounds = array<i64: 1, 32, 32>}, {transform_indices = @transform_10, window_bounds = array<i64: 1, 1, 32>}, {transform_indices = @transform_11, window_bounds = array<i64: 1, 1, 32>}, {transform_indices = @transform_12, window_bounds = array<i64: 1, 1, 32>}, {transform_indices = @transform_13, window_bounds = array<i64: 1, 32, 128>}, {transform_indices = @transform_14, window_bounds = array<i64: 1, 1, 128>}, {transform_indices = @transform_15, window_bounds = array<i64: 1, 128, 32>}, {transform_indices = @transform_16, window_bounds = array<i64: 1, 1, 32>}, {pipeline_mode = #tpu.pipeline_mode<synchronous>, transform_indices = @transform_17, window_bounds = array<i64: 1, 32>}, {pipeline_mode = #tpu.pipeline_mode<synchronous>, transform_indices = @transform_18, window_bounds = array<i64: 1, 32>}, {pipeline_mode = #tpu.pipeline_mode<synchronous>, transform_indices = @transform_19, window_bounds = array<i64: 32, 128>}, {pipeline_mode = #tpu.pipeline_mode<synchronous>, transform_indices = @transform_20, window_bounds = array<i64: 1, 128>}, {transform_indices = @transform_21, window_bounds = array<i64: 2, 8, 128>}]} {
    %c0_i32 = arith.constant 0 : i32
    %0 = arith.cmpi eq, %arg1, %c0_i32 : i32
    %1 = arith.extui %0 : i1 to i32
    %c0_i32_0 = arith.constant 0 : i32
    %2 = arith.cmpi ne, %1, %c0_i32_0 : i32
    scf.if %2 {
      %c0_89 = arith.constant 0 : index
      %c0_90 = arith.constant 0 : index
      %c0_91 = arith.constant 0 : index
      %203 = vector.load %arg2[%c0_89, %c0_90, %c0_91] : memref<2x8x32xf32, #tpu.memory_space<vmem>>, vector<2x8x32xf32>
      %204 = vector.shape_cast %203 : vector<2x8x32xf32> to vector<16x32xf32>
      %c0_92 = arith.constant 0 : index
      %c0_93 = arith.constant 0 : index
      %205 = vector.load %arg24[%c0_92, %c0_93] : memref<16x32xf32, #tpu.memory_space<vmem>>, vector<16x32xf32>
      tpu.vector_store %arg24[%c0_92, %c0_93], %204 {strides = array<i32>} : memref<16x32xf32, #tpu.memory_space<vmem>>, vector<16x32xf32>,
    } else {
    }
    %c0 = arith.constant 0 : index
    %c0_1 = arith.constant 0 : index
    %3 = vector.load %arg24[%c0, %c0_1] : memref<16x32xf32, #tpu.memory_space<vmem>>, vector<16x32xf32>
    %c0_2 = arith.constant 0 : index
    %c0_3 = arith.constant 0 : index
    %c0_4 = arith.constant 0 : index
    %4 = vector.load %arg3[%c0_2, %c0_3, %c0_4] : memref<2x128x128xbf16, #tpu.memory_space<vmem>>, vector<2x128x128xbf16>
    %5 = vector.shape_cast %4 : vector<2x128x128xbf16> to vector<256x128xbf16>
    %c0_5 = arith.constant 0 : index
    %c0_6 = arith.constant 0 : index
    %c0_7 = arith.constant 0 : index
    %6 = vector.load %arg4[%c0_5, %c0_6, %c0_7] : memref<2x1x128xf32, #tpu.memory_space<vmem>>, vector<2x1x128xf32>
    %c0_8 = arith.constant 0 : index
    %c0_9 = arith.constant 0 : index
    %c0_10 = arith.constant 0 : index
    %7 = vector.load %arg5[%c0_8, %c0_9, %c0_10] : memref<1x1x32xf32, #tpu.memory_space<vmem>>, vector<1x1x32xf32>
    %8 = vector.shape_cast %7 : vector<1x1x32xf32> to vector<1x32xf32>
    %c0_11 = arith.constant 0 : index
    %c0_12 = arith.constant 0 : index
    %c0_13 = arith.constant 0 : index
    %9 = vector.load %arg6[%c0_11, %c0_12, %c0_13] : memref<1x1x32xf32, #tpu.memory_space<vmem>>, vector<1x1x32xf32>
    %10 = vector.shape_cast %9 : vector<1x1x32xf32> to vector<1x32xf32>
    %cst = arith.constant dense<0.000000e+00> : vector<16xf32>
    %11 = vector.multi_reduction <add>, %3, %cst [1] : vector<16x32xf32> to vector<16xf32>
    %12 = vector.shape_cast %11 : vector<16xf32> to vector<16x1xf32>
    %cst_14 = arith.constant 3.200000e+01 : f32
    %13 = vector.broadcast %cst_14 : f32 to vector<16x1xf32>
    %14 = arith.divf %12, %13 : vector<16x1xf32>
    %15 = arith.mulf %3, %3 : vector<16x32xf32>
    %cst_15 = arith.constant dense<0.000000e+00> : vector<16xf32>
    %16 = vector.multi_reduction <add>, %15, %cst_15 [1] : vector<16x32xf32> to vector<16xf32>
    %17 = vector.shape_cast %16 : vector<16xf32> to vector<16x1xf32>
    %cst_16 = arith.constant 3.200000e+01 : f32
    %18 = vector.broadcast %cst_16 : f32 to vector<16x1xf32>
    %19 = arith.divf %17, %18 : vector<16x1xf32>
    %20 = arith.mulf %14, %14 : vector<16x1xf32>
    %21 = arith.subf %19, %20 : vector<16x1xf32>
    %cst_17 = arith.constant 0.000000e+00 : f32
    %22 = vector.broadcast %cst_17 : f32 to vector<16x1xf32>
    %23 = arith.maximumf %21, %22 : vector<16x1xf32>
    %cst_18 = arith.constant 9.99999974E-6 : f32
    %24 = vector.broadcast %cst_18 : f32 to vector<16x1xf32>
    %25 = arith.addf %23, %24 : vector<16x1xf32>
    %26 = math.rsqrt %25 : vector<16x1xf32>
    %27 = vector.broadcast %14 : vector<16x1xf32> to vector<16x32xf32>
    %28 = arith.subf %3, %27 : vector<16x32xf32>
    %29 = vector.broadcast %26 : vector<16x1xf32> to vector<16x32xf32>
    %30 = arith.mulf %28, %29 : vector<16x32xf32>
    %31 = vector.broadcast %8 : vector<1x32xf32> to vector<16x32xf32>
    %32 = arith.mulf %30, %31 : vector<16x32xf32>
    %33 = vector.broadcast %10 : vector<1x32xf32> to vector<16x32xf32>
    %34 = arith.addf %32, %33 : vector<16x32xf32>
    %35 = arith.truncf %34 : vector<16x32xf32> to vector<16x32xbf16>
    %c0_19 = arith.constant 0 : index
    %c0_20 = arith.constant 0 : index
    %c0_21 = arith.constant 0 : index
    %36 = vector.load %arg7[%c0_19, %c0_20, %c0_21] : memref<1x32x32xbf16, #tpu.memory_space<vmem>>, vector<1x32x32xbf16>
    %37 = vector.shape_cast %36 : vector<1x32x32xbf16> to vector<32x32xbf16>
    %cst_22 = arith.constant dense<0.000000e+00> : vector<16x32xf32>
    %38 = tpu.matmul %35, %37, %cst_22 {dimension_numbers = #tpu.dot_dimension_numbers<[1], [0], [0], [1], [0, 0, 1, 1], [], []>} : vector<16x32xbf16>, vector<32x32xbf16>, vector<16x32xf32> -> vector<16x32xf32>
    %c0_23 = arith.constant 0 : index
    %c0_24 = arith.constant 0 : index
    %c0_25 = arith.constant 0 : index
    %39 = vector.load %arg8[%c0_23, %c0_24, %c0_25] : memref<1x1x32xf32, #tpu.memory_space<vmem>>, vector<1x1x32xf32>
    %40 = vector.shape_cast %39 : vector<1x1x32xf32> to vector<1x32xf32>
    %41 = vector.broadcast %40 : vector<1x32xf32> to vector<16x32xf32>
    %42 = arith.addf %38, %41 : vector<16x32xf32>
    %c0_26 = arith.constant 0 : index
    %c0_27 = arith.constant 0 : index
    %c0_28 = arith.constant 0 : index
    %43 = vector.load %arg9[%c0_26, %c0_27, %c0_28] : memref<1x128x64xbf16, #tpu.memory_space<vmem>>, vector<1x128x64xbf16>
    %44 = vector.shape_cast %43 : vector<1x128x64xbf16> to vector<128x64xbf16>
    %cst_29 = arith.constant dense<0.000000e+00> : vector<256x64xf32>
    %45 = tpu.matmul %5, %44, %cst_29 {dimension_numbers = #tpu.dot_dimension_numbers<[1], [0], [0], [1], [0, 0, 1, 1], [], []>} : vector<256x128xbf16>, vector<128x64xbf16>, vector<256x64xf32> -> vector<256x64xf32>
    %c0_30 = arith.constant 0 : index
    %c0_31 = arith.constant 0 : index
    %c0_32 = arith.constant 0 : index
    %46 = vector.load %arg10[%c0_30, %c0_31, %c0_32] : memref<1x1x64xf32, #tpu.memory_space<vmem>>, vector<1x1x64xf32>
    %47 = vector.shape_cast %46 : vector<1x1x64xf32> to vector<1x64xf32>
    %48 = vector.broadcast %47 : vector<1x64xf32> to vector<256x64xf32>
    %49 = arith.addf %45, %48 : vector<256x64xf32>
    %50 = arith.truncf %42 : vector<16x32xf32> to vector<16x32xbf16>
    %51 = vector.shape_cast %50 : vector<16x32xbf16> to vector<2x8x32xbf16>
    %52 = vector.extract_strided_slice %49 {offsets = [0, 0], sizes = [256, 32], strides = [1, 1]} : vector<256x64xf32> to vector<256x32xf32>
    %53 = arith.truncf %52 : vector<256x32xf32> to vector<256x32xbf16>
    %54 = vector.shape_cast %53 : vector<256x32xbf16> to vector<2x128x32xbf16>
    %55 = vector.extract_strided_slice %49 {offsets = [0, 32], sizes = [256, 32], strides = [1, 1]} : vector<256x64xf32> to vector<256x32xf32>
    %56 = arith.truncf %55 : vector<256x32xf32> to vector<256x32xbf16>
    %57 = vector.shape_cast %56 : vector<256x32xbf16> to vector<2x128x32xbf16>
    %58 = vector.extract_strided_slice %51 {offsets = [0, 0, 0], sizes = [2, 8, 8], strides = [1, 1, 1]} : vector<2x8x32xbf16> to vector<2x8x8xbf16>
    %59 = vector.extract_strided_slice %54 {offsets = [0, 0, 0], sizes = [2, 128, 8], strides = [1, 1, 1]} : vector<2x128x32xbf16> to vector<2x128x8xbf16>
    "tpu.trace_start"() <{level = 10 : i32, message = "bqd,bkd->bqk"}> : () -> ()
    %cst_33 = arith.constant dense<0.000000e+00> : vector<2x8x128xf32>
    %60 = tpu.matmul %58, %59, %cst_33 {dimension_numbers = #tpu.dot_dimension_numbers<[2], [2], [1], [1], [0, 0, 0, 1, 1, 1], [0], [0]>} : vector<2x8x8xbf16>, vector<2x128x8xbf16>, vector<2x8x128xf32> -> vector<2x8x128xf32>
    "tpu.trace_stop"() : () -> ()
    %61 = vector.broadcast %6 : vector<2x1x128xf32> to vector<2x8x128xf32>
    %62 = arith.addf %60, %61 : vector<2x8x128xf32>
    %cst_34 = arith.constant dense<0xFF800000> : vector<2x8xf32>
    %63 = vector.multi_reduction <maximumf>, %62, %cst_34 [2] : vector<2x8x128xf32> to vector<2x8xf32>
    %64 = vector.shape_cast %63 : vector<2x8xf32> to vector<2x8x1xf32>
    %65 = vector.broadcast %64 : vector<2x8x1xf32> to vector<2x8x128xf32>
    %66 = arith.subf %62, %65 : vector<2x8x128xf32>
    %67 = math.exp %66 : vector<2x8x128xf32>
    %cst_35 = arith.constant dense<0.000000e+00> : vector<2x8xf32>
    %68 = vector.multi_reduction <add>, %67, %cst_35 [2] : vector<2x8x128xf32> to vector<2x8xf32>
    %69 = vector.shape_cast %68 : vector<2x8xf32> to vector<2x8x1xf32>
    %70 = tpu.reciprocal %69 : vector<2x8x1xf32> -> vector<2x8x1xf32>
    %71 = vector.broadcast %70 : vector<2x8x1xf32> to vector<2x8x128xf32>
    %72 = arith.mulf %67, %71 : vector<2x8x128xf32>
    %73 = arith.truncf %72 : vector<2x8x128xf32> to vector<2x8x128xbf16>
    %74 = vector.extract_strided_slice %57 {offsets = [0, 0, 0], sizes = [2, 128, 8], strides = [1, 1, 1]} : vector<2x128x32xbf16> to vector<2x128x8xbf16>
    "tpu.trace_start"() <{level = 10 : i32, message = "bqk,bkd->bqd"}> : () -> ()
    %cst_36 = arith.constant dense<0.000000e+00> : vector<2x8x8xf32>
    %75 = tpu.matmul %73, %74, %cst_36 {dimension_numbers = #tpu.dot_dimension_numbers<[2], [1], [1], [2], [0, 0, 0, 1, 1, 2], [0], [0]>} : vector<2x8x128xbf16>, vector<2x128x8xbf16>, vector<2x8x8xf32> -> vector<2x8x8xf32>
    "tpu.trace_stop"() : () -> ()
    %76 = vector.extract_strided_slice %51 {offsets = [0, 0, 8], sizes = [2, 8, 8], strides = [1, 1, 1]} : vector<2x8x32xbf16> to vector<2x8x8xbf16>
    %77 = vector.extract_strided_slice %54 {offsets = [0, 0, 8], sizes = [2, 128, 8], strides = [1, 1, 1]} : vector<2x128x32xbf16> to vector<2x128x8xbf16>
    "tpu.trace_start"() <{level = 10 : i32, message = "bqd,bkd->bqk"}> : () -> ()
    %cst_37 = arith.constant dense<0.000000e+00> : vector<2x8x128xf32>
    %78 = tpu.matmul %76, %77, %cst_37 {dimension_numbers = #tpu.dot_dimension_numbers<[2], [2], [1], [1], [0, 0, 0, 1, 1, 1], [0], [0]>} : vector<2x8x8xbf16>, vector<2x128x8xbf16>, vector<2x8x128xf32> -> vector<2x8x128xf32>
    "tpu.trace_stop"() : () -> ()
    %79 = vector.broadcast %6 : vector<2x1x128xf32> to vector<2x8x128xf32>
    %80 = arith.addf %78, %79 : vector<2x8x128xf32>
    %cst_38 = arith.constant dense<0xFF800000> : vector<2x8xf32>
    %81 = vector.multi_reduction <maximumf>, %80, %cst_38 [2] : vector<2x8x128xf32> to vector<2x8xf32>
    %82 = vector.shape_cast %81 : vector<2x8xf32> to vector<2x8x1xf32>
    %83 = vector.broadcast %82 : vector<2x8x1xf32> to vector<2x8x128xf32>
    %84 = arith.subf %80, %83 : vector<2x8x128xf32>
    %85 = math.exp %84 : vector<2x8x128xf32>
    %cst_39 = arith.constant dense<0.000000e+00> : vector<2x8xf32>
    %86 = vector.multi_reduction <add>, %85, %cst_39 [2] : vector<2x8x128xf32> to vector<2x8xf32>
    %87 = vector.shape_cast %86 : vector<2x8xf32> to vector<2x8x1xf32>
    %88 = tpu.reciprocal %87 : vector<2x8x1xf32> -> vector<2x8x1xf32>
    %89 = vector.broadcast %88 : vector<2x8x1xf32> to vector<2x8x128xf32>
    %90 = arith.mulf %85, %89 : vector<2x8x128xf32>
    %91 = arith.truncf %90 : vector<2x8x128xf32> to vector<2x8x128xbf16>
    %92 = vector.extract_strided_slice %57 {offsets = [0, 0, 8], sizes = [2, 128, 8], strides = [1, 1, 1]} : vector<2x128x32xbf16> to vector<2x128x8xbf16>
    "tpu.trace_start"() <{level = 10 : i32, message = "bqk,bkd->bqd"}> : () -> ()
    %cst_40 = arith.constant dense<0.000000e+00> : vector<2x8x8xf32>
    %93 = tpu.matmul %91, %92, %cst_40 {dimension_numbers = #tpu.dot_dimension_numbers<[2], [1], [1], [2], [0, 0, 0, 1, 1, 2], [0], [0]>} : vector<2x8x128xbf16>, vector<2x128x8xbf16>, vector<2x8x8xf32> -> vector<2x8x8xf32>
    "tpu.trace_stop"() : () -> ()
    %94 = vector.extract_strided_slice %51 {offsets = [0, 0, 16], sizes = [2, 8, 8], strides = [1, 1, 1]} : vector<2x8x32xbf16> to vector<2x8x8xbf16>
    %95 = vector.extract_strided_slice %54 {offsets = [0, 0, 16], sizes = [2, 128, 8], strides = [1, 1, 1]} : vector<2x128x32xbf16> to vector<2x128x8xbf16>
    "tpu.trace_start"() <{level = 10 : i32, message = "bqd,bkd->bqk"}> : () -> ()
    %cst_41 = arith.constant dense<0.000000e+00> : vector<2x8x128xf32>
    %96 = tpu.matmul %94, %95, %cst_41 {dimension_numbers = #tpu.dot_dimension_numbers<[2], [2], [1], [1], [0, 0, 0, 1, 1, 1], [0], [0]>} : vector<2x8x8xbf16>, vector<2x128x8xbf16>, vector<2x8x128xf32> -> vector<2x8x128xf32>
    "tpu.trace_stop"() : () -> ()
    %97 = vector.broadcast %6 : vector<2x1x128xf32> to vector<2x8x128xf32>
    %98 = arith.addf %96, %97 : vector<2x8x128xf32>
    %cst_42 = arith.constant dense<0xFF800000> : vector<2x8xf32>
    %99 = vector.multi_reduction <maximumf>, %98, %cst_42 [2] : vector<2x8x128xf32> to vector<2x8xf32>
    %100 = vector.shape_cast %99 : vector<2x8xf32> to vector<2x8x1xf32>
    %101 = vector.broadcast %100 : vector<2x8x1xf32> to vector<2x8x128xf32>
    %102 = arith.subf %98, %101 : vector<2x8x128xf32>
    %103 = math.exp %102 : vector<2x8x128xf32>
    %cst_43 = arith.constant dense<0.000000e+00> : vector<2x8xf32>
    %104 = vector.multi_reduction <add>, %103, %cst_43 [2] : vector<2x8x128xf32> to vector<2x8xf32>
    %105 = vector.shape_cast %104 : vector<2x8xf32> to vector<2x8x1xf32>
    %106 = tpu.reciprocal %105 : vector<2x8x1xf32> -> vector<2x8x1xf32>
    %107 = vector.broadcast %106 : vector<2x8x1xf32> to vector<2x8x128xf32>
    %108 = arith.mulf %103, %107 : vector<2x8x128xf32>
    %109 = arith.truncf %108 : vector<2x8x128xf32> to vector<2x8x128xbf16>
    %110 = vector.extract_strided_slice %57 {offsets = [0, 0, 16], sizes = [2, 128, 8], strides = [1, 1, 1]} : vector<2x128x32xbf16> to vector<2x128x8xbf16>
    "tpu.trace_start"() <{level = 10 : i32, message = "bqk,bkd->bqd"}> : () -> ()
    %cst_44 = arith.constant dense<0.000000e+00> : vector<2x8x8xf32>
    %111 = tpu.matmul %109, %110, %cst_44 {dimension_numbers = #tpu.dot_dimension_numbers<[2], [1], [1], [2], [0, 0, 0, 1, 1, 2], [0], [0]>} : vector<2x8x128xbf16>, vector<2x128x8xbf16>, vector<2x8x8xf32> -> vector<2x8x8xf32>
    "tpu.trace_stop"() : () -> ()
    %112 = vector.extract_strided_slice %51 {offsets = [0, 0, 24], sizes = [2, 8, 8], strides = [1, 1, 1]} : vector<2x8x32xbf16> to vector<2x8x8xbf16>
    %113 = vector.extract_strided_slice %54 {offsets = [0, 0, 24], sizes = [2, 128, 8], strides = [1, 1, 1]} : vector<2x128x32xbf16> to vector<2x128x8xbf16>
    "tpu.trace_start"() <{level = 10 : i32, message = "bqd,bkd->bqk"}> : () -> ()
    %cst_45 = arith.constant dense<0.000000e+00> : vector<2x8x128xf32>
    %114 = tpu.matmul %112, %113, %cst_45 {dimension_numbers = #tpu.dot_dimension_numbers<[2], [2], [1], [1], [0, 0, 0, 1, 1, 1], [0], [0]>} : vector<2x8x8xbf16>, vector<2x128x8xbf16>, vector<2x8x128xf32> -> vector<2x8x128xf32>
    "tpu.trace_stop"() : () -> ()
    %115 = vector.broadcast %6 : vector<2x1x128xf32> to vector<2x8x128xf32>
    %116 = arith.addf %114, %115 : vector<2x8x128xf32>
    %cst_46 = arith.constant dense<0xFF800000> : vector<2x8xf32>
    %117 = vector.multi_reduction <maximumf>, %116, %cst_46 [2] : vector<2x8x128xf32> to vector<2x8xf32>
    %118 = vector.shape_cast %117 : vector<2x8xf32> to vector<2x8x1xf32>
    %119 = vector.broadcast %118 : vector<2x8x1xf32> to vector<2x8x128xf32>
    %120 = arith.subf %116, %119 : vector<2x8x128xf32>
    %121 = math.exp %120 : vector<2x8x128xf32>
    %cst_47 = arith.constant dense<0.000000e+00> : vector<2x8xf32>
    %122 = vector.multi_reduction <add>, %121, %cst_47 [2] : vector<2x8x128xf32> to vector<2x8xf32>
    %123 = vector.shape_cast %122 : vector<2x8xf32> to vector<2x8x1xf32>
    %124 = tpu.reciprocal %123 : vector<2x8x1xf32> -> vector<2x8x1xf32>
    %125 = vector.broadcast %124 : vector<2x8x1xf32> to vector<2x8x128xf32>
    %126 = arith.mulf %121, %125 : vector<2x8x128xf32>
    %127 = arith.truncf %126 : vector<2x8x128xf32> to vector<2x8x128xbf16>
    %128 = vector.extract_strided_slice %57 {offsets = [0, 0, 24], sizes = [2, 128, 8], strides = [1, 1, 1]} : vector<2x128x32xbf16> to vector<2x128x8xbf16>
    "tpu.trace_start"() <{level = 10 : i32, message = "bqk,bkd->bqd"}> : () -> ()
    %cst_48 = arith.constant dense<0.000000e+00> : vector<2x8x8xf32>
    %129 = tpu.matmul %127, %128, %cst_48 {dimension_numbers = #tpu.dot_dimension_numbers<[2], [1], [1], [2], [0, 0, 0, 1, 1, 2], [0], [0]>} : vector<2x8x128xbf16>, vector<2x128x8xbf16>, vector<2x8x8xf32> -> vector<2x8x8xf32>
    "tpu.trace_stop"() : () -> ()
    %130 = tpu.concatenate %75, %93, %111, %129 in 2 : vector<2x8x8xf32>, vector<2x8x8xf32>, vector<2x8x8xf32>, vector<2x8x8xf32> -> vector<2x8x32xf32>
    %131 = vector.shape_cast %130 : vector<2x8x32xf32> to vector<16x32xf32>
    %132 = arith.truncf %131 : vector<16x32xf32> to vector<16x32xbf16>
    %c0_49 = arith.constant 0 : index
    %c0_50 = arith.constant 0 : index
    %c0_51 = arith.constant 0 : index
    %133 = vector.load %arg11[%c0_49, %c0_50, %c0_51] : memref<1x32x32xbf16, #tpu.memory_space<vmem>>, vector<1x32x32xbf16>
    %134 = vector.shape_cast %133 : vector<1x32x32xbf16> to vector<32x32xbf16>
    %cst_52 = arith.constant dense<0.000000e+00> : vector<16x32xf32>
    %135 = tpu.matmul %132, %134, %cst_52 {dimension_numbers = #tpu.dot_dimension_numbers<[1], [0], [0], [1], [0, 0, 1, 1], [], []>} : vector<16x32xbf16>, vector<32x32xbf16>, vector<16x32xf32> -> vector<16x32xf32>
    %136 = arith.addf %3, %135 : vector<16x32xf32>
    %c0_53 = arith.constant 0 : index
    %c0_54 = arith.constant 0 : index
    %c0_55 = arith.constant 0 : index
    %137 = vector.load %arg12[%c0_53, %c0_54, %c0_55] : memref<1x1x32xf32, #tpu.memory_space<vmem>>, vector<1x1x32xf32>
    %138 = vector.shape_cast %137 : vector<1x1x32xf32> to vector<1x32xf32>
    %139 = vector.broadcast %138 : vector<1x32xf32> to vector<16x32xf32>
    %140 = arith.addf %136, %139 : vector<16x32xf32>
    %c0_56 = arith.constant 0 : index
    %c0_57 = arith.constant 0 : index
    %c0_58 = arith.constant 0 : index
    %141 = vector.load %arg13[%c0_56, %c0_57, %c0_58] : memref<1x1x32xf32, #tpu.memory_space<vmem>>, vector<1x1x32xf32>
    %142 = vector.shape_cast %141 : vector<1x1x32xf32> to vector<1x32xf32>
    %c0_59 = arith.constant 0 : index
    %c0_60 = arith.constant 0 : index
    %c0_61 = arith.constant 0 : index
    %143 = vector.load %arg14[%c0_59, %c0_60, %c0_61] : memref<1x1x32xf32, #tpu.memory_space<vmem>>, vector<1x1x32xf32>
    %144 = vector.shape_cast %143 : vector<1x1x32xf32> to vector<1x32xf32>
    %cst_62 = arith.constant dense<0.000000e+00> : vector<16xf32>
    %145 = vector.multi_reduction <add>, %140, %cst_62 [1] : vector<16x32xf32> to vector<16xf32>
    %146 = vector.shape_cast %145 : vector<16xf32> to vector<16x1xf32>
    %cst_63 = arith.constant 3.200000e+01 : f32
    %147 = vector.broadcast %cst_63 : f32 to vector<16x1xf32>
    %148 = arith.divf %146, %147 : vector<16x1xf32>
    %149 = arith.mulf %140, %140 : vector<16x32xf32>
    %cst_64 = arith.constant dense<0.000000e+00> : vector<16xf32>
    %150 = vector.multi_reduction <add>, %149, %cst_64 [1] : vector<16x32xf32> to vector<16xf32>
    %151 = vector.shape_cast %150 : vector<16xf32> to vector<16x1xf32>
    %cst_65 = arith.constant 3.200000e+01 : f32
    %152 = vector.broadcast %cst_65 : f32 to vector<16x1xf32>
    %153 = arith.divf %151, %152 : vector<16x1xf32>
    %154 = arith.mulf %148, %148 : vector<16x1xf32>
    %155 = arith.subf %153, %154 : vector<16x1xf32>
    %cst_66 = arith.constant 0.000000e+00 : f32
    %156 = vector.broadcast %cst_66 : f32 to vector<16x1xf32>
    %157 = arith.maximumf %155, %156 : vector<16x1xf32>
    %cst_67 = arith.constant 9.99999974E-6 : f32
    %158 = vector.broadcast %cst_67 : f32 to vector<16x1xf32>
    %159 = arith.addf %157, %158 : vector<16x1xf32>
    %160 = math.rsqrt %159 : vector<16x1xf32>
    %161 = vector.broadcast %148 : vector<16x1xf32> to vector<16x32xf32>
    %162 = arith.subf %140, %161 : vector<16x32xf32>
    %163 = vector.broadcast %160 : vector<16x1xf32> to vector<16x32xf32>
    %164 = arith.mulf %162, %163 : vector<16x32xf32>
    %165 = vector.broadcast %142 : vector<1x32xf32> to vector<16x32xf32>
    %166 = arith.mulf %164, %165 : vector<16x32xf32>
    %167 = vector.broadcast %144 : vector<1x32xf32> to vector<16x32xf32>
    %168 = arith.addf %166, %167 : vector<16x32xf32>
    %169 = arith.truncf %168 : vector<16x32xf32> to vector<16x32xbf16>
    %c0_68 = arith.constant 0 : index
    %c0_69 = arith.constant 0 : index
    %c0_70 = arith.constant 0 : index
    %170 = vector.load %arg15[%c0_68, %c0_69, %c0_70] : memref<1x32x128xbf16, #tpu.memory_space<vmem>>, vector<1x32x128xbf16>
    %171 = vector.shape_cast %170 : vector<1x32x128xbf16> to vector<32x128xbf16>
    %cst_71 = arith.constant dense<0.000000e+00> : vector<16x128xf32>
    %172 = tpu.matmul %169, %171, %cst_71 {dimension_numbers = #tpu.dot_dimension_numbers<[1], [0], [0], [1], [0, 0, 1, 1], [], []>} : vector<16x32xbf16>, vector<32x128xbf16>, vector<16x128xf32> -> vector<16x128xf32>
    %c0_72 = arith.constant 0 : index
    %c0_73 = arith.constant 0 : index
    %c0_74 = arith.constant 0 : index
    %173 = vector.load %arg16[%c0_72, %c0_73, %c0_74] : memref<1x1x128xf32, #tpu.memory_space<vmem>>, vector<1x1x128xf32>
    %174 = vector.shape_cast %173 : vector<1x1x128xf32> to vector<1x128xf32>
    %175 = vector.broadcast %174 : vector<1x128xf32> to vector<16x128xf32>
    %176 = arith.addf %172, %175 : vector<16x128xf32>
    %177 = arith.mulf %176, %176 : vector<16x128xf32>
    %178 = arith.mulf %176, %177 : vector<16x128xf32>
    %cst_75 = arith.constant 4.471500e-02 : f32
    %179 = vector.broadcast %cst_75 : f32 to vector<16x128xf32>
    %180 = arith.mulf %179, %178 : vector<16x128xf32>
    %181 = arith.addf %176, %180 : vector<16x128xf32>
    %cst_76 = arith.constant 0.797884583 : f32
    %182 = vector.broadcast %cst_76 : f32 to vector<16x128xf32>
    %183 = arith.mulf %182, %181 : vector<16x128xf32>
    %184 = math.tanh %183 : vector<16x128xf32>
    %cst_77 = arith.constant 1.000000e+00 : f32
    %185 = vector.broadcast %cst_77 : f32 to vector<16x128xf32>
    %186 = arith.addf %185, %184 : vector<16x128xf32>
    %cst_78 = arith.constant 5.000000e-01 : f32
    %187 = vector.broadcast %cst_78 : f32 to vector<16x128xf32>
    %188 = arith.mulf %187, %186 : vector<16x128xf32>
    %189 = arith.mulf %176, %188 : vector<16x128xf32>
    %190 = arith.truncf %189 : vector<16x128xf32> to vector<16x128xbf16>
    %c0_79 = arith.constant 0 : index
    %c0_80 = arith.constant 0 : index
    %c0_81 = arith.constant 0 : index
    %191 = vector.load %arg17[%c0_79, %c0_80, %c0_81] : memref<1x128x32xbf16, #tpu.memory_space<vmem>>, vector<1x128x32xbf16>
    %192 = vector.shape_cast %191 : vector<1x128x32xbf16> to vector<128x32xbf16>
    %cst_82 = arith.constant dense<0.000000e+00> : vector<16x32xf32>
    %193 = tpu.matmul %190, %192, %cst_82 {dimension_numbers = #tpu.dot_dimension_numbers<[1], [0], [0], [1], [0, 0, 1, 1], [], []>} : vector<16x128xbf16>, vector<128x32xbf16>, vector<16x32xf32> -> vector<16x32xf32>
    %194 = arith.addf %140, %193 : vector<16x32xf32>
    %c0_83 = arith.constant 0 : index
    %c0_84 = arith.constant 0 : index
    %c0_85 = arith.constant 0 : index
    %195 = vector.load %arg18[%c0_83, %c0_84, %c0_85] : memref<1x1x32xf32, #tpu.memory_space<vmem>>, vector<1x1x32xf32>
    %196 = vector.shape_cast %195 : vector<1x1x32xf32> to vector<1x32xf32>
    %197 = vector.broadcast %196 : vector<1x32xf32> to vector<16x32xf32>
    %198 = arith.addf %194, %197 : vector<16x32xf32>
    %c0_86 = arith.constant 0 : index
    %c0_87 = arith.constant 0 : index
    %199 = vector.load %arg24[%c0_86, %c0_87] : memref<16x32xf32, #tpu.memory_space<vmem>>, vector<16x32xf32>
    tpu.vector_store %arg24[%c0_86, %c0_87], %198 {strides = array<i32>} : memref<16x32xf32, #tpu.memory_space<vmem>>, vector<16x32xf32>,
    %c1_i32 = arith.constant 1 : i32
    %200 = arith.cmpi eq, %arg1, %c1_i32 : i32
    %201 = arith.extui %200 : i1 to i32
    %c0_i32_88 = arith.constant 0 : i32
    %202 = arith.cmpi ne, %201, %c0_i32_88 : i32
    scf.if %202 {
      %c0_89 = arith.constant 0 : index
      %c0_90 = arith.constant 0 : index
      %203 = vector.load %arg19[%c0_89, %c0_90] : memref<1x32xf32, #tpu.memory_space<vmem>>, vector<1x32xf32>
      %c0_91 = arith.constant 0 : index
      %c0_92 = arith.constant 0 : index
      %204 = vector.load %arg20[%c0_91, %c0_92] : memref<1x32xf32, #tpu.memory_space<vmem>>, vector<1x32xf32>
      %cst_93 = arith.constant dense<0.000000e+00> : vector<16xf32>
      %205 = vector.multi_reduction <add>, %198, %cst_93 [1] : vector<16x32xf32> to vector<16xf32>
      %206 = vector.shape_cast %205 : vector<16xf32> to vector<16x1xf32>
      %cst_94 = arith.constant 3.200000e+01 : f32
      %207 = vector.broadcast %cst_94 : f32 to vector<16x1xf32>
      %208 = arith.divf %206, %207 : vector<16x1xf32>
      %209 = arith.mulf %198, %198 : vector<16x32xf32>
      %cst_95 = arith.constant dense<0.000000e+00> : vector<16xf32>
      %210 = vector.multi_reduction <add>, %209, %cst_95 [1] : vector<16x32xf32> to vector<16xf32>
      %211 = vector.shape_cast %210 : vector<16xf32> to vector<16x1xf32>
      %cst_96 = arith.constant 3.200000e+01 : f32
      %212 = vector.broadcast %cst_96 : f32 to vector<16x1xf32>
      %213 = arith.divf %211, %212 : vector<16x1xf32>
      %214 = arith.mulf %208, %208 : vector<16x1xf32>
      %215 = arith.subf %213, %214 : vector<16x1xf32>
      %cst_97 = arith.constant 0.000000e+00 : f32
      %216 = vector.broadcast %cst_97 : f32 to vector<16x1xf32>
      %217 = arith.maximumf %215, %216 : vector<16x1xf32>
      %cst_98 = arith.constant 9.99999974E-6 : f32
      %218 = vector.broadcast %cst_98 : f32 to vector<16x1xf32>
      %219 = arith.addf %217, %218 : vector<16x1xf32>
      %220 = math.rsqrt %219 : vector<16x1xf32>
      %221 = vector.broadcast %208 : vector<16x1xf32> to vector<16x32xf32>
      %222 = arith.subf %198, %221 : vector<16x32xf32>
      %223 = vector.broadcast %220 : vector<16x1xf32> to vector<16x32xf32>
      %224 = arith.mulf %222, %223 : vector<16x32xf32>
      %225 = vector.broadcast %203 : vector<1x32xf32> to vector<16x32xf32>
      %226 = arith.mulf %224, %225 : vector<16x32xf32>
      %227 = vector.broadcast %204 : vector<1x32xf32> to vector<16x32xf32>
      %228 = arith.addf %226, %227 : vector<16x32xf32>
      %229 = arith.truncf %228 : vector<16x32xf32> to vector<16x32xbf16>
      %c0_99 = arith.constant 0 : index
      %c0_100 = arith.constant 0 : index
      %230 = vector.load %arg21[%c0_99, %c0_100] : memref<32x128xbf16, #tpu.memory_space<vmem>>, vector<32x128xbf16>
      %cst_101 = arith.constant dense<0.000000e+00> : vector<16x128xf32>
      %231 = tpu.matmul %229, %230, %cst_101 {dimension_numbers = #tpu.dot_dimension_numbers<[1], [0], [0], [1], [0, 0, 1, 1], [], []>} : vector<16x32xbf16>, vector<32x128xbf16>, vector<16x128xf32> -> vector<16x128xf32>
      %c0_102 = arith.constant 0 : index
      %c0_103 = arith.constant 0 : index
      %232 = vector.load %arg22[%c0_102, %c0_103] : memref<1x128xf32, #tpu.memory_space<vmem>>, vector<1x128xf32>
      %233 = vector.broadcast %232 : vector<1x128xf32> to vector<16x128xf32>
      %234 = arith.addf %231, %233 : vector<16x128xf32>
      %235 = vector.shape_cast %234 : vector<16x128xf32> to vector<2x8x128xf32>
      %c0_104 = arith.constant 0 : index
      %c0_105 = arith.constant 0 : index
      %c0_106 = arith.constant 0 : index
      %236 = vector.load %arg23[%c0_104, %c0_105, %c0_106] : memref<2x8x128xf32, #tpu.memory_space<vmem>>, vector<2x8x128xf32>
      tpu.vector_store %arg23[%c0_104, %c0_105, %c0_106], %235 {strides = array<i32>} : memref<2x8x128xf32, #tpu.memory_space<vmem>>, vector<2x8x128xf32>,
    } else {
    }
    return
  }
  func.func @transform_0(%arg0: i32, %arg1: i32) -> (i32, i32, i32) {
    %c0_i32 = arith.constant 0 : i32
    %c0_i32_0 = arith.constant 0 : i32
    %c0_i32_1 = arith.constant 0 : i32
    return %arg0, %c0_i32, %c0_i32_0 : i32, i32, i32
  }
  func.func @transform_1(%arg0: i32, %arg1: i32) -> (i32, i32, i32) {
    %c0_i32 = arith.constant 0 : i32
    %c0_i32_0 = arith.constant 0 : i32
    %c0_i32_1 = arith.constant 0 : i32
    return %arg0, %c0_i32, %c0_i32_0 : i32, i32, i32
  }
  func.func @transform_2(%arg0: i32, %arg1: i32) -> (i32, i32, i32) {
    %c0_i32 = arith.constant 0 : i32
    %c0_i32_0 = arith.constant 0 : i32
    %c0_i32_1 = arith.constant 0 : i32
    return %arg0, %c0_i32, %c0_i32_0 : i32, i32, i32
  }
  func.func @transform_3(%arg0: i32, %arg1: i32) -> (i32, i32, i32) {
    %c0_i32 = arith.constant 0 : i32
    %c0_i32_0 = arith.constant 0 : i32
    %c0_i32_1 = arith.constant 0 : i32
    return %arg1, %c0_i32, %c0_i32_0 : i32, i32, i32
  }
  func.func @transform_4(%arg0: i32, %arg1: i32) -> (i32, i32, i32) {
    %c0_i32 = arith.constant 0 : i32
    %c0_i32_0 = arith.constant 0 : i32
    %c0_i32_1 = arith.constant 0 : i32
    return %arg1, %c0_i32, %c0_i32_0 : i32, i32, i32
  }
  func.func @transform_5(%arg0: i32, %arg1: i32) -> (i32, i32, i32) {
    %c0_i32 = arith.constant 0 : i32
    %c0_i32_0 = arith.constant 0 : i32
    %c0_i32_1 = arith.constant 0 : i32
    return %arg1, %c0_i32, %c0_i32_0 : i32, i32, i32
  }
  func.func @transform_6(%arg0: i32, %arg1: i32) -> (i32, i32, i32) {
    %c0_i32 = arith.constant 0 : i32
    %c0_i32_0 = arith.constant 0 : i32
    %c0_i32_1 = arith.constant 0 : i32
    return %arg1, %c0_i32, %c0_i32_0 : i32, i32, i32
  }
  func.func @transform_7(%arg0: i32, %arg1: i32) -> (i32, i32, i32) {
    %c0_i32 = arith.constant 0 : i32
    %c0_i32_0 = arith.constant 0 : i32
    %c0_i32_1 = arith.constant 0 : i32
    return %arg1, %c0_i32, %c0_i32_0 : i32, i32, i32
  }
  func.func @transform_8(%arg0: i32, %arg1: i32) -> (i32, i32, i32) {
    %c0_i32 = arith.constant 0 : i32
    %c0_i32_0 = arith.constant 0 : i32
    %c0_i32_1 = arith.constant 0 : i32
    return %arg1, %c0_i32, %c0_i32_0 : i32, i32, i32
  }
  func.func @transform_9(%arg0: i32, %arg1: i32) -> (i32, i32, i32) {
    %c0_i32 = arith.constant 0 : i32
    %c0_i32_0 = arith.constant 0 : i32
    %c0_i32_1 = arith.constant 0 : i32
    return %arg1, %c0_i32, %c0_i32_0 : i32, i32, i32
  }
  func.func @transform_10(%arg0: i32, %arg1: i32) -> (i32, i32, i32) {
    %c0_i32 = arith.constant 0 : i32
    %c0_i32_0 = arith.constant 0 : i32
    %c0_i32_1 = arith.constant 0 : i32
    return %arg1, %c0_i32, %c0_i32_0 : i32, i32, i32
  }
  func.func @transform_11(%arg0: i32, %arg1: i32) -> (i32, i32, i32) {
    %c0_i32 = arith.constant 0 : i32
    %c0_i32_0 = arith.constant 0 : i32
    %c0_i32_1 = arith.constant 0 : i32
    return %arg1, %c0_i32, %c0_i32_0 : i32, i32, i32
  }
  func.func @transform_12(%arg0: i32, %arg1: i32) -> (i32, i32, i32) {
    %c0_i32 = arith.constant 0 : i32
    %c0_i32_0 = arith.constant 0 : i32
    %c0_i32_1 = arith.constant 0 : i32
    return %arg1, %c0_i32, %c0_i32_0 : i32, i32, i32
  }
  func.func @transform_13(%arg0: i32, %arg1: i32) -> (i32, i32, i32) {
    %c0_i32 = arith.constant 0 : i32
    %c0_i32_0 = arith.constant 0 : i32
    %c0_i32_1 = arith.constant 0 : i32
    return %arg1, %c0_i32, %c0_i32_0 : i32, i32, i32
  }
  func.func @transform_14(%arg0: i32, %arg1: i32) -> (i32, i32, i32) {
    %c0_i32 = arith.constant 0 : i32
    %c0_i32_0 = arith.constant 0 : i32
    %c0_i32_1 = arith.constant 0 : i32
    return %arg1, %c0_i32, %c0_i32_0 : i32, i32, i32
  }
  func.func @transform_15(%arg0: i32, %arg1: i32) -> (i32, i32, i32) {
    %c0_i32 = arith.constant 0 : i32
    %c0_i32_0 = arith.constant 0 : i32
    %c0_i32_1 = arith.constant 0 : i32
    return %arg1, %c0_i32, %c0_i32_0 : i32, i32, i32
  }
  func.func @transform_16(%arg0: i32, %arg1: i32) -> (i32, i32, i32) {
    %c0_i32 = arith.constant 0 : i32
    %c0_i32_0 = arith.constant 0 : i32
    %c0_i32_1 = arith.constant 0 : i32
    return %arg1, %c0_i32, %c0_i32_0 : i32, i32, i32
  }
  func.func @transform_17(%arg0: i32, %arg1: i32) -> (i32, i32) {
    %c0_i32 = arith.constant 0 : i32
    %c0_i32_0 = arith.constant 0 : i32
    %c0_i32_1 = arith.constant 0 : i32
    return %c0_i32, %c0_i32_0 : i32, i32
  }
  func.func @transform_18(%arg0: i32, %arg1: i32) -> (i32, i32) {
    %c0_i32 = arith.constant 0 : i32
    %c0_i32_0 = arith.constant 0 : i32
    %c0_i32_1 = arith.constant 0 : i32
    return %c0_i32, %c0_i32_0 : i32, i32
  }
  func.func @transform_19(%arg0: i32, %arg1: i32) -> (i32, i32) {
    %c0_i32 = arith.constant 0 : i32
    %c0_i32_0 = arith.constant 0 : i32
    %c0_i32_1 = arith.constant 0 : i32
    return %c0_i32, %c0_i32_0 : i32, i32
  }
  func.func @transform_20(%arg0: i32, %arg1: i32) -> (i32, i32) {
    %c0_i32 = arith.constant 0 : i32
    %c0_i32_0 = arith.constant 0 : i32
    %c0_i32_1 = arith.constant 0 : i32
    return %c0_i32, %c0_i32_0 : i32, i32
  }
  func.func @transform_21(%arg0: i32, %arg1: i32) -> (i32, i32, i32) {
    %c0_i32 = arith.constant 0 : i32
    %c0_i32_0 = arith.constant 0 : i32
    %c0_i32_1 = arith.constant 0 : i32
    return %arg0, %c0_i32, %c0_i32_0 : i32, i32, i32
  }
}

</mosaic_0001>

<bundles_post_ra>
// kernel: diffusion_transformer_forward.1
= control target key start
LH: loop header
LB: loop body
LE: loop exit
PB: predicated region body
PF: predicated region fallthrough
CT: control target
= control target key end

     0   :  { %s4527_s0 = inlined_call_operand.vmem [shape: f32[2,8,32], index: 0, kind: input, shape index: {}]   ;;  %s4528_s1 = inlined_call_operand.vmem [shape: bf16[2,128,128], index: 1, kind: input, shape index: {}]   ;;  %s4529_s2 = inlined_call_operand.vmem [shape: f32[2,1,128], index: 2, kind: input, shape index: {}]   ;;  %s4530_s3 = inlined_call_operand.vmem [shape: f32[2,1,32], index: 3, kind: input, shape index: {}]   ;;  %s4531_s4 = inlined_call_operand.vmem [shape: f32[2,1,32], index: 4, kind: input, shape index: {}]   ;;  %s4532_s5 = inlined_call_operand.vmem [shape: bf16[2,32,32], index: 5, kind: input, shape index: {}]   ;;  %s4533_s6 = inlined_call_operand.vmem [shape: f32[2,1,32], index: 6, kind: input, shape index: {}]   ;;  %s4534_s7 = inlined_call_operand.vmem [shape: bf16[2,128,64], index: 7, kind: input, shape index: {}]   ;;  %s4535_s8 = inlined_call_operand.vmem [shape: f32[2,1,64], index: 8, kind: input, shape index: {}]   ;;  %s4536_s9 = inlined_call_operand.vmem [shape: bf16[2,32,32], index: 9, kind: input, shape index: {}]   ;;  %s4537_s10 = inlined_call_operand.vmem [shape: f32[2,1,32], index: 10, kind: input, shape index: {}]   ;;  %s4538_s11 = inlined_call_operand.vmem [shape: f32[2,1,32], index: 11, kind: input, shape index: {}]   ;;  %s4539_s12 = inlined_call_operand.vmem [shape: f32[2,1,32], index: 12, kind: input, shape index: {}]   ;;  %s4540_s13 = inlined_call_operand.vmem [shape: bf16[2,32,128], index: 13, kind: input, shape index: {}]   ;;  %s4541_s14 = inlined_call_operand.vmem [shape: f32[2,1,128], index: 14, kind: input, shape index: {}]   ;;  %s4542_s15 = inlined_call_operand.vmem [shape: bf16[2,128,32], index: 15, kind: input, shape index: {}]   ;;  %s4543_s16 = inlined_call_operand.vmem [shape: f32[2,1,32], index: 16, kind: input, shape index: {}]   ;;  %s4544_s17 = inlined_call_operand.vmem [shape: f32[1,32], index: 17, kind: input, shape index: {}]   ;;  %s4545_s18 = inlined_call_operand.vmem [shape: f32[1,32], index: 18, kind: input, shape index: {}]   ;;  %s4546_s19 = inlined_call_operand.vmem [shape: bf16[32,128], index: 19, kind: input, shape index: {}]   ;;  %s4547_s20 = inlined_call_operand.vmem [shape: f32[1,128], index: 20, kind: input, shape index: {}]   ;;  %s4548_s21 = inlined_call_operand.hbm [shape: f32[2,8,128], index: 21, kind: output, shape index: {}]  }
   0x1   :  { %4558 = sst [smem:[#allocation15_spill]] %s4527_s0 }
   0x2   :  { %4559 = sst [smem:[#allocation16_spill]] %s4528_s1 }
   0x3   :  { %4560 = sst [smem:[#allocation17_spill]] %s4529_s2 }
   0x4   :  { %4561 = sst [smem:[#allocation18_spill]] %s4530_s3 }
   0x5   :  { %4562 = sst [smem:[#allocation19_spill]] %s4531_s4 }
   0x6   :  { %4563 = sst [smem:[#allocation20_spill]] %s4532_s5 }
   0x7   :  { %4564 = sst [smem:[#allocation21_spill]] %s4533_s6 }
   0x8   :  { %4565 = sst [smem:[#allocation22_spill]] %s4534_s7 }
   0x9   :  { %4566 = sst [smem:[#allocation23_spill]] %s4536_s9 }
   0xa   :  { %4567 = sst [smem:[#allocation24_spill]] %s4544_s17 }
   0xb   :  { %4568 = sst [smem:[#allocation25_spill]] %s4545_s18 }
   0xc   :  { %4569 = sst [smem:[#allocation26_spill]] %s4546_s19 }
   0xd   :  { %4570 = sst [smem:[#allocation27_spill]] %s4547_s20 }
   0xe   :  { %4571 = sst [smem:[#allocation28_spill]] %s4548_s21 }
   0xf   :  { %26 = vsyncpa [#allocation4], 0  ;;  %s3540_s2 = smov 0   ;;  %s3542_s25 = smov 0  }
  0x10   :  { %s3544_s26 = smov 0  }
  0x11 LB: > { %4572 = sst [smem:[#allocation6_spill]] %s3411_s25  ;;  %s41_s3 = sadd.s32 1, %s3411_s25  ;;  %s3415_s26 = sphi %s3544_s26, %s32_s26   ;;  %s3411_s25 = sphi %s3542_s25, %s4614_s25   ;;  %s3407_s2 = sphi %s3540_s2, %s4613_s2  }
  0x12   : > { %4573 = sst [smem:[#allocation7_spill]] %s3415_s26  ;;  %p42_p0 = scmp.ge.s32.totalorder %s41_s3, 2 }
  0x13   : > { %p3003_p1 = scmp.ge.s32.totalorder %s3415_s26, 1  ;;  %p745_p2 = scmp.lt.s32.totalorder %s3415_s26, 3 }
  0x14   : > { %s4616_s3 = smov (%p42_p0, %s41_s3), 0 }
  0x15   : > { %4574 = sst [smem:[#allocation8_spill]] %s4616_s3  ;;  %p746_p3 = pnand %p3003_p1, %p745_p2 }
  0x17   : > { %749 = sbr.rel (%p746_p3) target bundleno = 2365 (0x93d), region = 104 }
  0x1c   : > { %p880_p4 = scmp.lt.s32.totalorder %s3407_s2, 1  ;;  %s4578_s21 = sld [smem:[#allocation20_spill]] }
  0x1d   : > { %s4579_s7 = sld [smem:[#allocation22_spill]]  ;;  %p3014_p5 = scmp.ne.s32.totalorder %s3407_s2, 0 }
  0x1e   : > { %s3563_s28 = scalar_select %p880_p4, %s3407_s2, 1 }
  0x1f   : > { %s4580_s9 = sld [smem:[#allocation23_spill]] }
  0x20   : > { %s3192_s24 = sshll.u32 %s3563_s28, 4  ;;  %s3193_s20 = sshll.u32 %s3563_s28, 6 }
  0x21   : > { %s3613_s4 = scalar_lea.vmem %s4540_s13, %s3192_s24  ;;  %s923_s5 = scalar_lea.vmem %s4541_s14, %s3563_s28 }
  0x22   : > { %s3581_s26 = scalar_lea.vmem %s4578_s21, %s3192_s24  ;;  %s909_s21 = scalar_lea.vmem %s4537_s10, %s3563_s28 }
  0x23   : > { %s3587_s19 = scalar_lea.vmem %s4579_s7, %s3193_s20  ;;  %s915_s7 = scalar_lea.vmem %s4539_s12, %s3563_s28 }
  0x24   : > { %s3622_s3 = scalar_lea.vmem %s4542_s15, %s3193_s20  ;;  %s931_s1 = scalar_lea.vmem %s4543_s16, %s3563_s28 }
  0x25   : > { %s3596_s27 = scalar_lea.vmem %s4580_s9, %s3192_s24  ;;  %937 = sbr.rel (%p3014_p5) target bundleno = 47 (0x2f), region = 108 }
  0x26   : > { %s4581_s24 = sld [smem:[#allocation15_spill]] (!%p3014_p5) }
  0x2a   : > { %vm940_vm0 = vcmask 261120  }
  0x2c   : > { %v938_v0 = vld [vmem:[%s4581_s24] sm:$0xff]  ;;  %v939_v1 = vld [vmem:[%s4581_s24 + $0x8] sm:$0xff] }
  0x2d   : > { %941 = vst.msk [vmem:[#allocation2] sm:$0xff] %vm940_vm0, %v938_v0 }
  0x2e   : > { %942 = vst.msk [vmem:[#allocation2 + $0x8] sm:$0xff] %vm940_vm0, %v939_v1 }
  0x2f PF: > { %v3222_v2 = vld [vmem:[%s3587_s19 + $0x38] sm:$0xff]  ;;  %vm981_vm1 = vcmask 261120   ;;  %v3221_v4 = vld [vmem:[%s3587_s19 + $0x30] sm:$0xff]  ;;  %v3220_v9 = vld [vmem:[%s3587_s19 + $0x28] sm:$0xff]  ;;  %s4582_s22 = sld [smem:[#allocation16_spill]]  ;;  %v3417_v23 = vmov 32.0  }
  0x30   : > { %1251 = vmatpush.bf16.msra.mxu1 %v3222_v2  ;;  %v3219_v12 = vld [vmem:[%s3587_s19 + $0x20] sm:$0xff]  ;;  %v3218_v14 = vld [vmem:[%s3587_s19 + $0x18] sm:$0xff]  ;;  %v3217_v15 = vld [vmem:[%s3587_s19 + $0x10] sm:$0xff]  ;;  %3306 = vrcp.f32 %v3417_v23  ;;  %s4584_s17 = sld [smem:[#allocation18_spill]]  ;;  %s3420_s25 = smov 104   ;;  %vm1420_vm9 = vcmask 64512  }
  0x31   : > { %v3216_v16 = vld [vmem:[%s3587_s19 + $0x8] sm:$0xff]  ;;  %v3215_v17 = vld [vmem:[%s3587_s19] sm:$0xff]  ;;  %s4586_s30 = sld [smem:[#allocation19_spill]]  ;;  %s3419_s19 = smov 112  }
  0x32   : > { %v3214_v50 = vld [vmem:[%s3581_s26 + $0x8] sm:$0xff]  ;;  %v3213_v53 = vld [vmem:[%s3581_s26] sm:$0xff]  ;;  %s4588_s26 = scalar_lea.vmem %s4535_s8, %s3563_s28  ;;  %s4589_s29 = sld [smem:[#allocation21_spill]] }
  0x33   : > { %1079 = vmatpush.bf16.msra.mxu0 %v3214_v50  ;;  %s4591_s18 = sld [smem:[#allocation17_spill]]  ;;  %s3424_s20 = smov 72  }
  0x34   : > { %v3636_v3 = vld [vmem:[#allocation2] sm:$0xff]  ;;  %1252 = vmatpush.bf16.msra.mxu1 %v3221_v4  ;;  %s3425_s23 = smov 8   ;;  %p3178_p6 = scmp.ne.s32.totalorder %s3407_s2, 1 }
  0x35   : > { %v982_v5 = vsel %vm981_vm1, %v3636_v3, 0.0  ;;  %v997_v6 = vmul.f32 %v3636_v3, %v3636_v3  ;;  %v3643_v7 = vld [vmem:[#allocation2 + $0x8] sm:$0xff]  ;;  %v3197_v18 = vld [vmem:[%s4582_s22] sm:$0xff]  ;;  %v3199_v20 = vld [vmem:[%s4582_s22 + $0x10] sm:$0xff] }
  0x36   : > { %983 = vadd.xlane.f32.xlu0 %v982_v5  ;;  %v998_v10 = vmul.f32 %v3643_v7, %v3643_v7  ;;  %v985_v11 = vsel %vm981_vm1, %v3643_v7, 0.0  ;;  %v3198_v19 = vld [vmem:[%s4582_s22 + $0x8] sm:$0xff]  ;;  %v3200_v21 = vld [vmem:[%s4582_s22 + $0x18] sm:$0xff]  ;;  %v3201_v22 = vld [vmem:[%s4582_s22 + $0x20] sm:$0xff]  ;;  %v3307_v24 = vpop.eup %3306  ;;  %s4585_s6 = scalar_lea.vmem %s4584_s17, %s3563_s28 }
  0x37   : > { %v999_v8 = vsel %vm981_vm1, %v997_v6, 0.0  ;;  %v989_v25 = vmul.f32 32.0, %v3307_v24  ;;  %v3202_v28 = vld [vmem:[%s4582_s22 + $0x28] sm:$0xff]  ;;  %vm993_vm2 = vweird.f32 %v3307_v24  ;;  %v3203_v37 = vld [vmem:[%s4582_s22 + $0x30] sm:$0xff]  ;;  %v3204_v54 = vld [vmem:[%s4582_s22 + $0x38] sm:$0xff]  ;;  %1080 = vmatpush.bf16.msra.mxu0 %v3213_v53  ;;  %s4587_s9 = scalar_lea.vmem %s4586_s30, %s3563_s28 }
  0x38   : > { %1000 = vadd.xlane.f32.xlu1 %v999_v8  ;;  %1253 = vmatpush.bf16.msra.mxu1 %v3220_v9  ;;  %v1002_v13 = vsel %vm981_vm1, %v998_v10, 0.0  ;;  %v3296_v0 = vld [vmem:[%s4585_s6] ss:$0 sm:$0xff]  ;;  %v3206_v23 = vld [vmem:[%s4582_s22 + $0x48] sm:$0xff]  ;;  %s3418_s6 = smov 120  }
  0x39   : > { %v990_v26 = vsub.f32 1.0, %v989_v25  ;;  %v3205_v9 = vld [vmem:[%s4582_s22 + $0x40] sm:$0xff] }
  0x3b   : > { %v991_v27 = vmul.f32 %v3307_v24, %v990_v26 }
  0x3c   : > { %1254 = vmatpush.bf16.msra.mxu1 %v3219_v12 }
  0x3d   : > { %v992_v29 = vadd.f32 %v3307_v24, %v991_v27 }
  0x3e   : > { %986 = vadd.xlane.f32.xlu0 %v985_v11 }
  0x3f   : > { %v3675_v30 = vsel %vm993_vm2, %v3307_v24, %v992_v29 }
  0x40   : > { %1003 = vadd.xlane.f32.xlu1 %v1002_v13  ;;  %1255 = vmatpush.bf16.msra.mxu1 %v3218_v14  ;;  %4583 = vst [vmem:[#allocation9_spill] sm:$0xff] %v3675_v30 }
  0x44   : > { %1256 = vmatpush.bf16.msra.mxu1 %v3217_v15 }
  0x48   : > { %1257 = vmatpush.bf16.msra.mxu1 %v3216_v16 }
  0x4c   : > { %1258 = vmatpush.bf16.msra.mxu1 %v3215_v17 }
  0x4f   : > { %1259 = vmatmul.bf16.vlgmr.msra.gmra.mxu1 %v3197_v18 }
  0x5f   : > { %1264 = vmatmul.bf16.gmra.mxu1 %v3198_v19 }
  0x6f   : > { %1269 = vmatmul.bf16.gmra.mxu1 %v3199_v20 }
  0x7f   : > { %1274 = vmatmul.bf16.gmra.mxu1 %v3200_v21 }
  0x8f   : > { %1279 = vmatmul.bf16.gmra.mxu1 %v3201_v22 }
  0x9f   : > { %1284 = vmatmul.bf16.gmra.mxu1 %v3202_v28 }
  0xa9   : > { %v984_v31 = vpop.xlane.xlu0 %983 }
  0xaa   : > { %v995_v32 = vmul.f32 %v3675_v30, %v984_v31 }
  0xab   : > { %v1001_v33 = vpop.xlane.xlu1 %1000 }
  0xac   : > { %v1007_v34 = vmul.f32 %v995_v32, %v995_v32  ;;  %v1005_v35 = vmul.f32 %v1001_v33, %v3675_v30  ;;  %v1035_v59 = vsub.f32 %v3636_v3, %v995_v32  ;;  %v3297_v3 = vld [vmem:[%s4587_s9] ss:$0 sm:$0xff] }
  0xae   : > { %v1009_v36 = vsub.f32 %v1005_v35, %v1007_v34  ;;  %v3207_v34 = vld [vmem:[%s4582_s22 + $0x50] sm:$0xff] }
  0xaf   : > { %1289 = vmatmul.bf16.gmra.mxu1 %v3203_v37 }
  0xb0   : > { %v1011_v38 = vmax.f32 %v1009_v36, 0.0 }
  0xb1   : > { %v987_v39 = vpop.xlane.xlu0 %986 }
  0xb2   : > { %v1013_v40 = vadd.f32 1e-05, %v1011_v38  ;;  %v996_v41 = vmul.f32 %v3675_v30, %v987_v39 }
  0xb3   : > { %v1004_v42 = vpop.xlane.xlu1 %1003 }
  0xb4   : > { %3308 = vrsqrt.f32 %v1013_v40  ;;  %v1008_v43 = vmul.f32 %v996_v41, %v996_v41  ;;  %v1006_v44 = vmul.f32 %v1004_v42, %v3675_v30  ;;  %vm1021_vm3 = vweird.f32 %v1013_v40 }
  0xb5   : > { %v1036_v2 = vsub.f32 %v3643_v7, %v996_v41  ;;  %v3709_v7 = vld [vmem:[%s4588_s26] ss:$0 sm:$0xff]  ;;  %s4590_s26 = scalar_lea.vmem %s4589_s29, %s3563_s28  ;;  %s3426_s29 = smov 16  }
  0xb6   : > { %v1010_v45 = vsub.f32 %v1006_v44, %v1008_v43  ;;  %v3208_v44 = vld [vmem:[%s4582_s22 + $0x58] sm:$0xff] }
  0xb8   : > { %v1012_v46 = vmax.f32 %v1010_v45, 0.0 }
  0xba   : > { %v3309_v47 = vpop.eup %3308  ;;  %v1014_v49 = vadd.f32 1e-05, %v1012_v46 }
  0xbb   : > { %v1016_v48 = vmul.f32 %v3309_v47, %v1013_v40  ;;  %vm1022_vm4 = vweird.f32 %v3309_v47 }
  0xbc   : > { %3310 = vrsqrt.f32 %v1014_v49  ;;  %vm1023_vm5 = vmor %vm1021_vm3, %vm1022_vm4  ;;  %vm1031_vm6 = vweird.f32 %v1014_v49 }
  0xbd   : > { %v1017_v51 = vmul.f32 %v3309_v47, %v1016_v48 }
  0xbf   : > { %v1018_v52 = vmul.f32 0.5, %v1017_v51  ;;  %1294 = vmatmul.bf16.gmra.mxu1 %v3204_v54  ;;  %v3209_v54 = vld [vmem:[%s4582_s22 + $0x60] sm:$0xff] }
  0xc1   : > { %v1019_v55 = vsub.f32 1.5, %v1018_v52 }
  0xc2   : > { %v3311_v56 = vpop.eup %3310 }
  0xc3   : > { %v1020_v57 = vmul.f32 %v3309_v47, %v1019_v55  ;;  %v1026_v58 = vmul.f32 %v3311_v56, %v1014_v49  ;;  %vm1032_vm7 = vweird.f32 %v3311_v56 }
  0xc4   : > { %vm1033_vm8 = vmor %vm1031_vm6, %vm1032_vm7 }
  0xc5   : > { %v1027_v60 = vmul.f32 %v3311_v56, %v1026_v58  ;;  %v1024_v61 = vsel %vm1023_vm5, %v3309_v47, %v1020_v57 }
  0xc6   : > { %v1037_v63 = vmul.f32 %v1035_v59, %v1024_v61 }
  0xc7   : > { %v1028_v62 = vmul.f32 0.5, %v1027_v60 }
  0xc8   : > { %v1042_v5 = vmul.f32 %v3296_v0, %v1037_v63 }
  0xc9   : > { %v1029_v1 = vsub.f32 1.5, %v1028_v62 }
  0xca   : > { %v1047_v12 = vadd.f32 %v3297_v3, %v1042_v5 }
  0xcb   : > { %v1030_v4 = vmul.f32 %v3311_v56, %v1029_v1 }
  0xcc   : > { %v1260_v10 = vpop.f32.mrf.mxu1 }
  0xcd   : > { %v1034_v6 = vsel %vm1033_vm8, %v3311_v56, %v1030_v4  ;;  %v1261_v15 = vadd.f32 %v3709_v7, %v1260_v10 }
  0xce   : > { %v1038_v8 = vmul.f32 %v1036_v2, %v1034_v6 }
  0xcf   : > { %1299 = vmatmul.bf16.gmra.mxu1 %v3205_v9  ;;  %v1342_v17 = vpack.c.bf16 %v1261_v15, %v1261_v15 }
  0xd0   : > { %v1043_v11 = vmul.f32 %v3296_v0, %v1038_v8  ;;  %v3210_v0 = vld [vmem:[%s4582_s22 + $0x68] sm:$0xff] }
  0xd1   : > { %v1396_v20 = vunpack.c.l.b16 %v1342_v17 }
  0xd2   : > { %v1048_v13 = vadd.f32 %v3297_v3, %v1043_v11  ;;  %v3211_v11 = vld [vmem:[%s4582_s22 + $0x70] sm:$0xff] }
  0xd4   : > { %v1049_v14 = vpack.c.bf16 %v1048_v13, %v1047_v12  ;;  %v1262_v16 = vpop.f32.mrf.mxu1 }
  0xd5   : > { %v1263_v18 = vadd.f32 %v3709_v7, %v1262_v16 }
  0xd6   : > { %3023 = vmatmul.msk.bf16.vlgmr.msra.gmra.mxu0 %vm981_vm1, %v1049_v14 }
  0xd7   : > { %v1343_v19 = vpack.c.bf16 %v1263_v18, %v1263_v18 }
  0xd9   : > { %v1397_v21 = vunpack.c.l.b16 %v1343_v19 }
  0xdb   : > { %v3714_v22 = vpack.c.b16 %v1397_v21, %v1396_v20  ;;  %v3212_v21 = vld [vmem:[%s4582_s22 + $0x78] sm:$0xff] }
  0xdc   : > { %v1265_v24 = vpop.f32.mrf.mxu1 }
  0xdd   : > { %1666 = vrot.lane.b32.xlu0 %v3714_v22, %s3418_s6  ;;  %v1266_v25 = vadd.f32 %v3709_v7, %v1265_v24 }
  0xdf   : > { %1304 = vmatmul.bf16.gmra.mxu1 %v3206_v23  ;;  %v1344_v27 = vpack.c.bf16 %v1266_v25, %v1266_v25 }
  0xe1   : > { %v1398_v31 = vunpack.c.l.b16 %v1344_v27 }
  0xe4   : > { %v1267_v26 = vpop.f32.mrf.mxu1 }
  0xe5   : > { %v1268_v28 = vadd.f32 %v3709_v7, %v1267_v26  ;;  %1905 = vrot.lane.b32.xlu0 %v3714_v22, %s3419_s19 }
  0xe7   : > { %v1345_v29 = vpack.c.bf16 %v1268_v28, %v1268_v28 }
  0xe9   : > { %v1399_v32 = vunpack.c.l.b16 %v1345_v29 }
  0xeb   : > { %v3725_v33 = vpack.c.b16 %v1399_v32, %v1398_v31 }
  0xec   : > { %v1270_v35 = vpop.f32.mrf.mxu1 }
  0xed   : > { %1668 = vrot.lane.b32.xlu1 %v3725_v33, %s3418_s6  ;;  %v1271_v36 = vadd.f32 %v3709_v7, %v1270_v35  ;;  %v3298_v35 = vld [vmem:[%s4590_s26] ss:$0 sm:$0xff]  ;;  %s3427_s26 = smov 24  }
  0xef   : > { %1309 = vmatmul.bf16.gmra.mxu1 %v3207_v34  ;;  %v1346_v38 = vpack.c.bf16 %v1271_v36, %v1271_v36 }
  0xf1   : > { %v1400_v41 = vunpack.c.l.b16 %v1346_v38 }
  0xf4   : > { %v1272_v37 = vpop.f32.mrf.mxu1 }
  0xf5   : > { %v1273_v39 = vadd.f32 %v3709_v7, %v1272_v37  ;;  %1907 = vrot.lane.b32.xlu1 %v3725_v33, %s3419_s19 }
  0xf7   : > { %v1347_v40 = vpack.c.bf16 %v1273_v39, %v1273_v39 }
  0xf9   : > { %v1401_v42 = vunpack.c.l.b16 %v1347_v40 }
  0xfb   : > { %v3736_v43 = vpack.c.b16 %v1401_v42, %v1400_v41 }
  0xfc   : > { %v1275_v45 = vpop.f32.mrf.mxu1 }
  0xfd   : > { %1909 = vrot.lane.b32.xlu2 %v3736_v43, %s3419_s19  ;;  %1670 = vrot.lane.b32.xlu1 %v3736_v43, %s3418_s6  ;;  %v1276_v46 = vadd.f32 %v3709_v7, %v1275_v45 }
  0xff   : > { %1314 = vmatmul.bf16.gmra.mxu1 %v3208_v44  ;;  %v1348_v48 = vpack.c.bf16 %v1276_v46, %v1276_v46 }
 0x101   : > { %v1402_v51 = vunpack.c.l.b16 %v1348_v48 }
 0x104   : > { %v1277_v47 = vpop.f32.mrf.mxu1 }
 0x105   : > { %v1278_v49 = vadd.f32 %v3709_v7, %v1277_v47 }
 0x107   : > { %v1349_v50 = vpack.c.bf16 %v1278_v49, %v1278_v49 }
 0x109   : > { %v1403_v52 = vunpack.c.l.b16 %v1349_v50 }
 0x10b   : > { %v3747_v53 = vpack.c.b16 %v1403_v52, %v1402_v51 }
 0x10c   : > { %v1280_v55 = vpop.f32.mrf.mxu1 }
 0x10d   : > { %1672 = vrot.lane.b32.xlu2 %v3747_v53, %s3418_s6  ;;  %1911 = vrot.lane.b32.xlu0 %v3747_v53, %s3419_s19  ;;  %v1281_v56 = vadd.f32 %v3709_v7, %v1280_v55 }
 0x10f   : > { %1319 = vmatmul.bf16.gmra.mxu1 %v3209_v54  ;;  %v1350_v58 = vpack.c.bf16 %v1281_v56, %v1281_v56 }
 0x111   : > { %v1404_v61 = vunpack.c.l.b16 %v1350_v58 }
 0x114   : > { %v1282_v57 = vpop.f32.mrf.mxu1 }
 0x115   : > { %v1283_v59 = vadd.f32 %v3709_v7, %v1282_v57  ;;  %2147 = vrot.lane.b32.xlu0 %v3747_v53, %s3420_s25 }
 0x117   : > { %v1351_v60 = vpack.c.bf16 %v1283_v59, %v1283_v59 }
 0x119   : > { %v1405_v62 = vunpack.c.l.b16 %v1351_v60 }
 0x11b   : > { %v3760_v63 = vpack.c.b16 %v1405_v62, %v1404_v61 }
 0x11c   : > { %v1285_v1 = vpop.f32.mrf.mxu1 }
 0x11d   : > { %1674 = vrot.lane.b32.xlu2 %v3760_v63, %s3418_s6  ;;  %1913 = vrot.lane.b32.xlu1 %v3760_v63, %s3419_s19  ;;  %v1286_v2 = vadd.f32 %v3709_v7, %v1285_v1  ;;  %v1437_v62 = vsel %vm1420_vm9, %v3760_v63, 0 }
 0x11f   : > { %1324 = vmatmul.bf16.gmra.mxu1 %v3210_v0  ;;  %v1352_v5 = vpack.c.bf16 %v1286_v2, %v1286_v2 }
 0x121   : > { %v1406_v8 = vunpack.c.l.b16 %v1352_v5 }
 0x124   : > { %v1287_v4 = vpop.f32.mrf.mxu1 }
 0x125   : > { %v1288_v3 = vadd.f32 %v3709_v7, %v1287_v4  ;;  %2149 = vrot.lane.b32.xlu1 %v3760_v63, %s3420_s25 }
 0x127   : > { %v1353_v6 = vpack.c.bf16 %v1288_v3, %v1288_v3 }
 0x129   : > { %v1407_v9 = vunpack.c.l.b16 %v1353_v6 }
 0x12b   : > { %v3773_v10 = vpack.c.b16 %v1407_v9, %v1406_v8  ;;  %v1434_v8 = vsel %vm1420_vm9, %v3747_v53, 0 }
 0x12c   : > { %v1290_v12 = vpop.f32.mrf.mxu1 }
 0x12d   : > { %1915 = vrot.lane.b32.xlu2 %v3773_v10, %s3419_s19  ;;  %1676 = vrot.lane.b32.xlu0 %v3773_v10, %s3418_s6  ;;  %v1291_v13 = vadd.f32 %v3709_v7, %v1290_v12  ;;  %v1440_v55 = vsel %vm1420_vm9, %v3773_v10, 0 }
 0x12f   : > { %1329 = vmatmul.bf16.gmra.mxu1 %v3211_v11  ;;  %v1354_v15 = vpack.c.bf16 %v1291_v13, %v1291_v13 }
 0x131   : > { %v1408_v18 = vunpack.c.l.b16 %v1354_v15  ;;  %v1431_v15 = vsel %vm1420_vm9, %v3736_v43, 0 }
 0x134   : > { %v1292_v14 = vpop.f32.mrf.mxu1 }
 0x135   : > { %v1293_v16 = vadd.f32 %v3709_v7, %v1292_v14  ;;  %2151 = vrot.lane.b32.xlu2 %v3773_v10, %s3420_s25 }
 0x137   : > { %v1355_v17 = vpack.c.bf16 %v1293_v16, %v1293_v16 }
 0x139   : > { %v1409_v19 = vunpack.c.l.b16 %v1355_v17 }
 0x13b   : > { %v3786_v20 = vpack.c.b16 %v1409_v19, %v1408_v18 }
 0x13c   : > { %v1295_v23 = vpop.f32.mrf.mxu1 }
 0x13d   : > { %1678 = vrot.lane.b32.xlu2 %v3786_v20, %s3418_s6  ;;  %2153 = vrot.lane.b32.xlu0 %v3786_v20, %s3420_s25  ;;  %v1296_v24 = vadd.f32 %v3709_v7, %v1295_v23  ;;  %v1443_v45 = vsel %vm1420_vm9, %v3786_v20, 0 }
 0x13f   : > { %1334 = vmatmul.bf16.gmra.mxu1 %v3212_v21  ;;  %v1356_v26 = vpack.c.bf16 %v1296_v24, %v1296_v24  ;;  %v1428_v24 = vsel %vm1420_vm9, %v3725_v33, 0 }
 0x141   : > { %v1410_v29 = vunpack.c.l.b16 %v1356_v26 }
 0x144   : > { %v1297_v25 = vpop.f32.mrf.mxu1 }
 0x145   : > { %v1298_v27 = vadd.f32 %v3709_v7, %v1297_v25  ;;  %1917 = vrot.lane.b32.xlu2 %v3786_v20, %s3419_s19 }
 0x147   : > { %v1357_v28 = vpack.c.bf16 %v1298_v27, %v1298_v27 }
 0x149   : > { %v1411_v31 = vunpack.c.l.b16 %v1357_v28 }
 0x14b   : > { %v3799_v32 = vpack.c.b16 %v1411_v31, %v1410_v29  ;;  %v1425_v31 = vsel %vm1420_vm9, %v3714_v22, 0 }
 0x14c   : > { %v1300_v34 = vpop.f32.mrf.mxu1 }
 0x14d   : > { %1680 = vrot.lane.b32.xlu2 %v3799_v32, %s3418_s6  ;;  %2155 = vrot.lane.b32.xlu1 %v3799_v32, %s3420_s25  ;;  %v1446_v36 = vsel %vm1420_vm9, %v3799_v32, 0  ;;  %v1301_v39 = vadd.f32 %v3709_v7, %v1300_v34 }
 0x14e   : > { %1448 = vmatpush.bf16.xpose.msra.mxu2 %v1446_v36 }
 0x14f   : > { %v1358_v42 = vpack.c.bf16 %v1301_v39, %v1301_v39 }
 0x151   : > { %v1477_v48 = vunpack.c.l.b16 %v1358_v42  ;;  %v3884_v42 = vpop.permute.xlu0 %1666 }
 0x153   : > { %v1082_v37 = vpop.f32.mrf.mxu0 }
 0x154   : > { %v1083_v38 = vadd.f32 %v3298_v35, %v1082_v37  ;;  %v1302_v41 = vpop.f32.mrf.mxu1 }
 0x155   : > { %v1303_v44 = vadd.f32 %v3709_v7, %v1302_v41  ;;  %1919 = vrot.lane.b32.xlu2 %v3799_v32, %s3419_s19 }
 0x156   : > { %v3813_v40 = vpack.c.bf16 %v1083_v38, %v1083_v38  ;;  %1449 = vmatpush.bf16.xpose.msra.mxu2 %v1443_v45 }
 0x157   : > { %v1359_v47 = vpack.c.bf16 %v1303_v44, %v1303_v44  ;;  %v3850_v9 = vpop.permute.xlu2 %1909 }
 0x158   : > { %v1662_v46 = vunpack.c.l.b16 %v3813_v40 }
 0x159   : > { %v1478_v49 = vunpack.c.l.b16 %v1359_v47 }
 0x15a   : > { %v3821_v50 = vpack.c.b16 %v1662_v46, %v1662_v46 }
 0x15b   : > { %v1084_v51 = vpop.f32.mrf.mxu0  ;;  %v3823_v52 = vpack.c.b16 %v1478_v49, %v1477_v48 }
 0x15c   : > { %v1305_v54 = vpop.f32.mrf.mxu1  ;;  %v1085_v56 = vadd.f32 %v3298_v35, %v1084_v51 }
 0x15d   : > { %1727 = vrot.lane.b32.xlu0 %v3823_v52, %s3418_s6  ;;  %1664 = vrot.lane.b32.xlu2 %v3821_v50, %s3418_s6  ;;  %v1306_v57 = vadd.f32 %v3709_v7, %v1305_v54 }
 0x15e   : > { %1450 = vmatpush.bf16.xpose.msra.mxu2 %v1440_v55  ;;  %v3832_v58 = vpack.c.bf16 %v1085_v56, %v1085_v56  ;;  %v3890_v55 = vpop.permute.xlu0 %1905 }
 0x15f   : > { %v1360_v60 = vpack.c.bf16 %v1306_v57, %v1306_v57 }
 0x160   : > { %v1723_v0 = vunpack.c.l.b16 %v3832_v58 }
 0x161   : > { %v1479_v2 = vunpack.c.l.b16 %v1360_v60 }
 0x162   : > { %v3840_v5 = vpack.c.b16 %v1723_v0, %v1723_v0 }
 0x164   : > { %v1307_v59 = vpop.f32.mrf.mxu1 }
 0x165   : > { %v1308_v61 = vadd.f32 %v3709_v7, %v1307_v59  ;;  %1903 = vrot.lane.b32.xlu2 %v3821_v50, %s3419_s19 }
 0x166   : > { %1451 = vmatpush.bf16.xpose.msra.mxu2 %v1437_v62 }
 0x167   : > { %v1361_v1 = vpack.c.bf16 %v1308_v61, %v1308_v61  ;;  %v3858_v16 = vpop.permute.xlu2 %1672 }
 0x169   : > { %v1480_v4 = vunpack.c.l.b16 %v1361_v1 }
 0x16b   : > { %v3842_v3 = vpack.c.b16 %v1480_v4, %v1479_v2 }
 0x16c   : > { %v1310_v6 = vpop.f32.mrf.mxu1 }
 0x16d   : > { %1729 = vrot.lane.b32.xlu1 %v3842_v3, %s3418_s6  ;;  %1725 = vrot.lane.b32.xlu2 %v3840_v5, %s3418_s6  ;;  %v1311_v11 = vadd.f32 %v3709_v7, %v1310_v6 }
 0x16e   : > { %1452 = vmatpush.bf16.xpose.msra.mxu2 %v1434_v8 }
 0x16f   : > { %v1362_v13 = vpack.c.bf16 %v1311_v11, %v1311_v11 }
 0x171   : > { %v1481_v18 = vunpack.c.l.b16 %v1362_v13 }
 0x174   : > { %v1312_v12 = vpop.f32.mrf.mxu1 }
 0x175   : > { %v1313_v14 = vadd.f32 %v3709_v7, %v1312_v12  ;;  %1965 = vrot.lane.b32.xlu1 %v3842_v3, %s3419_s19 }
 0x176   : > { %1453 = vmatpush.bf16.xpose.msra.mxu2 %v1431_v15 }
 0x177   : > { %v1363_v17 = vpack.c.bf16 %v1313_v14, %v1313_v14  ;;  %v3866_v25 = vpop.permute.xlu2 %1674 }
 0x179   : > { %v1482_v19 = vunpack.c.l.b16 %v1363_v17 }
 0x17b   : > { %v3860_v21 = vpack.c.b16 %v1482_v19, %v1481_v18 }
 0x17c   : > { %v1315_v23 = vpop.f32.mrf.mxu1 }
 0x17d   : > { %1731 = vrot.lane.b32.xlu2 %v3860_v21, %s3418_s6  ;;  %v1316_v26 = vadd.f32 %v3709_v7, %v1315_v23 }
 0x17e   : > { %1454 = vmatpush.bf16.xpose.msra.mxu2 %v1428_v24 }
 0x17f   : > { %v1364_v28 = vpack.c.bf16 %v1316_v26, %v1316_v26  ;;  %v3901_v60 = vpop.permute.xlu0 %1911 }
 0x181   : > { %v1483_v36 = vunpack.c.l.b16 %v1364_v28 }
 0x184   : > { %v1317_v27 = vpop.f32.mrf.mxu1 }
 0x185   : > { %v1318_v29 = vadd.f32 %v3709_v7, %v1317_v27  ;;  %1967 = vrot.lane.b32.xlu2 %v3860_v21, %s3419_s19  ;;  %v1669_v27 = vpop.permute.xlu1 %1668 }
 0x186   : > { %1455 = vmatpush.bf16.xpose.msra.mxu2 %v1425_v31 }
 0x187   : > { %v1365_v34 = vpack.c.bf16 %v1318_v29, %v1318_v29  ;;  %v3874_v35 = vpop.permute.xlu2 %1915  ;;  %v3907_v13 = vpop.permute.xlu0 %2147 }
 0x189   : > { %v1484_v37 = vunpack.c.l.b16 %v1365_v34 }
 0x18b   : > { %v3876_v38 = vpack.c.b16 %v1484_v37, %v1483_v36  ;;  %v1698_v36 = vsel %vm1420_vm9, %v3866_v25, 0 }
 0x18c   : > { %v1320_v39 = vpop.f32.mrf.mxu1 }
 0x18d   : > { %1733 = vrot.lane.b32.xlu0 %v3876_v38, %s3418_s6  ;;  %3120 = vmatmul.msk.bf16.vlgmr.msra.gmra.mxu2 %vm1420_vm9, %v3813_v40  ;;  %v1321_v44 = vadd.f32 %v3709_v7, %v1320_v39  ;;  %v3928_v39 = vpop.permute.xlu1 %1907 }
 0x18f   : > { %v3882_v41 = vpop.permute.xlu2 %2151  ;;  %v1366_v46 = vpack.c.bf16 %v1321_v44, %v1321_v44 }
 0x191   : > { %v1485_v51 = vunpack.c.l.b16 %v1366_v46 }
 0x194   : > { %v1322_v45 = vpop.f32.mrf.mxu1 }
 0x195   : > { %v1323_v47 = vadd.f32 %v3709_v7, %v1322_v45  ;;  %1969 = vrot.lane.b32.xlu0 %v3876_v38, %s3419_s19 }
 0x197   : > { %v1367_v48 = vpack.c.bf16 %v1323_v47, %v1323_v47  ;;  %v1679_v49 = vpop.permute.xlu2 %1678 }
 0x198   : > { %v1704_v14 = vsel %vm1420_vm9, %v1679_v49, 0 }
 0x199   : > { %v1486_v54 = vunpack.c.l.b16 %v1367_v48  ;;  %v1695_v48 = vsel %vm1420_vm9, %v3858_v16, 0 }
 0x19b   : > { %v3892_v40 = vpack.c.b16 %v1486_v54, %v1485_v51  ;;  %v1671_v54 = vpop.permute.xlu1 %1670 }
 0x19c   : > { %v1325_v56 = vpop.f32.mrf.mxu1 }
 0x19d   : > { %1971 = vrot.lane.b32.xlu1 %v3892_v40, %s3419_s19  ;;  %1735 = vrot.lane.b32.xlu0 %v3892_v40, %s3418_s6  ;;  %v1326_v59 = vadd.f32 %v3709_v7, %v1325_v56  ;;  %v1692_v56 = vsel %vm1420_vm9, %v1671_v54, 0  ;;  %v2176_v54 = vsel %vm1420_vm9, %v3882_v41, 0 }
 0x19f   : > { %v3898_v57 = vpop.permute.xlu2 %1917  ;;  %v1368_v62 = vpack.c.bf16 %v1326_v59, %v1326_v59  ;;  %v1677_v18 = vpop.permute.xlu0 %1676 }
 0x1a0   : > { %v1701_v26 = vsel %vm1420_vm9, %v1677_v18, 0 }
 0x1a1   : > { %v1487_v6 = vunpack.c.l.b16 %v1368_v62  ;;  %v1689_v62 = vsel %vm1420_vm9, %v1669_v27, 0 }
 0x1a4   : > { %v1327_v61 = vpop.f32.mrf.mxu1 }
 0x1a5   : > { %v1328_v0 = vadd.f32 %v3709_v7, %v1327_v61 }
 0x1a7   : > { %v1369_v1 = vpack.c.bf16 %v1328_v0, %v1328_v0  ;;  %v1681_v2 = vpop.permute.xlu2 %1680 }
 0x1a8   : > { %v1707_v4 = vsel %vm1420_vm9, %v1681_v2, 0 }
 0x1a9   : > { %v1488_v8 = vunpack.c.l.b16 %v1369_v1  ;;  %1709 = vmatpush.bf16.xpose.msrb.mxu2 %v1707_v4  ;;  %v1517_v4 = vsel %vm1420_vm9, %v3892_v40, 0 }
 0x1ab   : > { %v3905_v11 = vpack.c.b16 %v1488_v8, %v1487_v6  ;;  %v1514_v6 = vsel %vm1420_vm9, %v3876_v38, 0  ;;  %v1940_v8 = vsel %vm1420_vm9, %v3874_v35, 0 }
 0x1ac   : > { %v1330_v12 = vpop.f32.mrf.mxu1 }
 0x1ad   : > { %1737 = vrot.lane.b32.xlu0 %v3905_v11, %s3418_s6  ;;  %1973 = vrot.lane.b32.xlu2 %v3905_v11, %s3419_s19  ;;  %v1331_v15 = vadd.f32 %v3709_v7, %v1330_v12  ;;  %v1520_v0 = vsel %vm1420_vm9, %v3905_v11, 0  ;;  %v1511_v12 = vsel %vm1420_vm9, %v3860_v21, 0 }
 0x1af   : > { %v1370_v19 = vpack.c.bf16 %v1331_v15, %v1331_v15  ;;  %v1920_v16 = vpop.permute.xlu2 %1919  ;;  %v2154_v35 = vpop.permute.xlu0 %2153 }
 0x1b0   : > { %v1946_v1 = vsel %vm1420_vm9, %v1920_v16, 0 }
 0x1b1   : > { %1710 = vmatpush.bf16.xpose.msrb.mxu2 %v1704_v14  ;;  %v1489_v28 = vunpack.c.l.b16 %v1370_v19  ;;  %v1914_v14 = vpop.permute.xlu1 %1913  ;;  %v1934_v19 = vsel %vm1420_vm9, %v3901_v60, 0  ;;  %v1931_v60 = vsel %vm1420_vm9, %v3850_v9, 0  ;;  %v1928_v9 = vsel %vm1420_vm9, %v3928_v39, 0 }
 0x1b2   : > { %v1937_v15 = vsel %vm1420_vm9, %v1914_v14, 0 }
 0x1b4   : > { %v1332_v17 = vpop.f32.mrf.mxu1 }
 0x1b5   : > { %v1333_v23 = vadd.f32 %v3709_v7, %v1332_v17  ;;  %2209 = vrot.lane.b32.xlu2 %v3905_v11, %s3420_s25  ;;  %v1508_v17 = vsel %vm1420_vm9, %v3842_v3, 0 }
 0x1b7   : > { %v1371_v24 = vpack.c.bf16 %v1333_v23, %v1333_v23  ;;  %v1665_v61 = vpop.permute.xlu2 %1664 }
 0x1b9   : > { %v1490_v29 = vunpack.c.l.b16 %v1371_v24  ;;  %1711 = vmatpush.bf16.xpose.msrb.mxu2 %v1701_v26  ;;  %v1505_v24 = vsel %vm1420_vm9, %v3823_v52, 0 }
 0x1bb   : > { %v3919_v31 = vpack.c.b16 %v1490_v29, %v1489_v28  ;;  %v2150_v28 = vpop.permute.xlu1 %2149 }
 0x1bc   : > { %v1335_v34 = vpop.f32.mrf.mxu1 }
 0x1bd   : > { %1975 = vrot.lane.b32.xlu0 %v3919_v31, %s3419_s19  ;;  %1739 = vrot.lane.b32.xlu2 %v3919_v31, %s3418_s6  ;;  %v1336_v37 = vadd.f32 %v3709_v7, %v1335_v34  ;;  %v1523_v59 = vsel %vm1420_vm9, %v3919_v31, 0 }
 0x1bf   : > { %v1372_v45 = vpack.c.bf16 %v1336_v37, %v1336_v37  ;;  %v3968_v2 = vpop.permute.xlu2 %1903 }
 0x1c1   : > { %1712 = vmatpush.bf16.xpose.msrb.mxu2 %v1698_v36  ;;  %v1491_v25 = vunpack.c.l.b16 %v1372_v45  ;;  %v1925_v45 = vsel %vm1420_vm9, %v3890_v55, 0  ;;  %v2179_v55 = vsel %vm1420_vm9, %v2154_v35, 0 }
 0x1c4   : > { %v1337_v44 = vpop.f32.mrf.mxu1 }
 0x1c5   : > { %v1338_v46 = vadd.f32 %v3709_v7, %v1337_v44  ;;  %2211 = vrot.lane.b32.xlu0 %v3919_v31, %s3420_s25  ;;  %2207 = vrot.lane.b32.xlu2 %v3892_v40, %s3420_s25 }
 0x1c7   : > { %v1373_v47 = vpack.c.bf16 %v1338_v46, %v1338_v46 }
 0x1c9   : > { %v1492_v49 = vunpack.c.l.b16 %v1373_v47  ;;  %1713 = vmatpush.bf16.xpose.msrb.mxu2 %v1695_v48 }
 0x1cb   : > { %v3937_v51 = vpack.c.b16 %v1492_v49, %v1491_v25 }
 0x1cd   : > { %1741 = vrot.lane.b32.xlu1 %v3937_v51, %s3418_s6  ;;  %2145 = vrot.lane.b32.xlu0 %v3736_v43, %s3420_s25  ;;  %v1526_v7 = vsel %vm1420_vm9, %v3937_v51, 0  ;;  %s3421_s6 = smov 96  }
 0x1ce   : > { %2205 = vrot.lane.b32.xlu2 %v3876_v38, %s3420_s25  ;;  %1528 = vmatpush.bf16.xpose.msra.mxu3 %v1526_v7 }
 0x1cf   : > { %v4016_v23 = vpop.permute.xlu0 %1727 }
 0x1d1   : > { %1714 = vmatpush.bf16.xpose.msrb.mxu2 %v1692_v56 }
 0x1d5   : > { %1963 = vrot.lane.b32.xlu1 %v3823_v52, %s3419_s19  ;;  %2143 = vrot.lane.b32.xlu0 %v3725_v33, %s3420_s25 }
 0x1d6   : > { %2139 = vrot.lane.b32.xlu2 %v3821_v50, %s3420_s25  ;;  %1529 = vmatpush.bf16.xpose.msra.mxu3 %v1523_v59  ;;  %v1686_v50 = vsel %vm1420_vm9, %v3884_v42, 0  ;;  %v3981_v42 = vpop.permute.xlu2 %1725  ;;  %v2173_v59 = vsel %vm1420_vm9, %v2150_v28, 0 }
 0x1d9   : > { %1715 = vmatpush.bf16.xpose.msrb.mxu2 %v1689_v62 }
 0x1dd   : > { %2203 = vrot.lane.b32.xlu0 %v3860_v21, %s3420_s25  ;;  %1961 = vrot.lane.b32.xlu1 %v3840_v5, %s3419_s19 }
 0x1de   : > { %2197 = vrot.lane.b32.xlu2 %v3840_v5, %s3420_s25  ;;  %1530 = vmatpush.bf16.xpose.msra.mxu3 %v1520_v0  ;;  %v1943_v5 = vsel %vm1420_vm9, %v3898_v57, 0  ;;  %v3993_v57 = vpop.permute.xlu2 %1731  ;;  %v2170_v0 = vsel %vm1420_vm9, %v3907_v13, 0 }
 0x1e1   : > { %1716 = vmatpush.bf16.xpose.msrb.mxu2 %v1686_v50 }
 0x1e5   : > { %2199 = vrot.lane.b32.xlu0 %v3823_v52, %s3420_s25  ;;  %2141 = vrot.lane.b32.xlu1 %v3714_v22, %s3420_s25 }
 0x1e6   : > { %1597 = vrot.lane.b32.xlu2 %v3773_v10, %s3421_s6  ;;  %1531 = vmatpush.bf16.xpose.msra.mxu3 %v1517_v4  ;;  %v4012_v18 = vpop.permute.xlu2 %1967 }
 0x1e8   : > { %3122 = vmatmul.msk.bf16.vlgmr.msrb.gmra.mxu2 %vm1420_vm9, %v1665_v61 }
 0x1e9   : > { %1948 = vmatpush.bf16.xpose.msra.mxu2 %v1946_v1 }
 0x1ed   : > { %1599 = vrot.lane.b32.xlu0 %v3786_v20, %s3421_s6  ;;  %1977 = vrot.lane.b32.xlu1 %v3937_v51, %s3419_s19  ;;  %s3422_s19 = smov 88  }
 0x1ee   : > { %1636 = vrot.lane.b32.xlu2 %v3919_v31, %s3421_s6  ;;  %1532 = vmatpush.bf16.xpose.msra.mxu3 %v1514_v6 }
 0x1f1   : > { %1949 = vmatpush.bf16.xpose.msra.mxu2 %v1943_v5 }
 0x1f5   : > { %1632 = vrot.lane.b32.xlu0 %v3892_v40, %s3421_s6  ;;  %2201 = vrot.lane.b32.xlu1 %v3842_v3, %s3420_s25 }
 0x1f6   : > { %1589 = vrot.lane.b32.xlu2 %v3725_v33, %s3421_s6  ;;  %1533 = vmatpush.bf16.xpose.msra.mxu3 %v1511_v12 }
 0x1f9   : > { %1950 = vmatpush.bf16.xpose.msra.mxu2 %v1940_v8 }
 0x1fd   : > { %1841 = vrot.lane.b32.xlu0 %v3786_v20, %s3422_s19  ;;  %1601 = vrot.lane.b32.xlu1 %v3799_v32, %s3421_s6 }
 0x1fe   : > { %1634 = vrot.lane.b32.xlu2 %v3905_v11, %s3421_s6  ;;  %1534 = vmatpush.bf16.xpose.msra.mxu3 %v1508_v17 }
 0x1ff   : > { %v4030_v27 = vpop.permute.xlu0 %1733 }
 0x201   : > { %1951 = vmatpush.bf16.xpose.msra.mxu2 %v1937_v15 }
 0x205   : > { %1626 = vrot.lane.b32.xlu0 %v3842_v3, %s3421_s6  ;;  %1595 = vrot.lane.b32.xlu1 %v3760_v63, %s3421_s6 }
 0x206   : > { %1587 = vrot.lane.b32.xlu2 %v3714_v22, %s3421_s6  ;;  %1535 = vmatpush.bf16.xpose.msra.mxu3 %v1505_v24 }
 0x207   : > { %v4026_v26 = vpop.permute.xlu2 %1973  ;;  %v4046_v36 = vpop.permute.xlu0 %1969 }
 0x209   : > { %1952 = vmatpush.bf16.xpose.msra.mxu2 %v1934_v19 }
 0x20d   : > { %1839 = vrot.lane.b32.xlu0 %v3773_v10, %s3422_s19  ;;  %2213 = vrot.lane.b32.xlu1 %v3937_v51, %s3420_s25  ;;  %s3423_s25 = smov 80  }
 0x20e   : > { %3121 = vmatmul.msk.bf16.vlgmr.msra.gmra.mxu3 %vm1420_vm9, %v3832_v58  ;;  %1630 = vrot.lane.b32.xlu2 %v3876_v38, %s3421_s6  ;;  %v2156_v58 = vpop.permute.xlu1 %2155 }
 0x20f   : > { %v4040_v29 = vpop.permute.xlu2 %2209  ;;  %v2182_v39 = vsel %vm1420_vm9, %v2156_v58, 0  ;;  %v1736_v46 = vpop.permute.xlu0 %1735 }
 0x210   : > { %v4042_v34 = vpop.f32.mrf.mxu2 }
 0x211   : > { %1953 = vmatpush.bf16.xpose.msra.mxu2 %v1931_v60  ;;  %v1759_v60 = vsel %vm1420_vm9, %v1736_v46, 0 }
 0x215   : > { %1624 = vrot.lane.b32.xlu0 %v3823_v52, %s3421_s6  ;;  %1593 = vrot.lane.b32.xlu1 %v3747_v53, %s3421_s6 }
 0x216   : > { %1843 = vrot.lane.b32.xlu2 %v3799_v32, %s3422_s19  ;;  %v4068_v48 = vpop.permute.xlu1 %1729 }
 0x217   : > { %v1740_v37 = vpop.permute.xlu2 %1739 }
 0x218   : > { %v1459_v44 = vpop.f32.mrf.mxu2  ;;  %v1765_v12 = vsel %vm1420_vm9, %v1740_v37, 0  ;;  %v1756_v37 = vsel %vm1420_vm9, %v4030_v27, 0 }
 0x219   : > { %1954 = vmatpush.bf16.xpose.msra.mxu2 %v1928_v9 }
 0x21d   : > { %1837 = vrot.lane.b32.xlu0 %v3760_v63, %s3422_s19  ;;  %1591 = vrot.lane.b32.xlu1 %v3736_v43, %s3421_s6 }
 0x21e   : > { %1876 = vrot.lane.b32.xlu2 %v3905_v11, %s3422_s19  ;;  %v4086_v7 = vpop.permute.xlu1 %1965 }
 0x21f   : > { %v4063_v47 = vpop.permute.xlu2 %2207  ;;  %v1738_v25 = vpop.permute.xlu0 %1737 }
 0x220   : > { %v1762_v35 = vsel %vm1420_vm9, %v1738_v25, 0 }
 0x221   : > { %1955 = vmatpush.bf16.xpose.msra.mxu2 %v1925_v45 }
 0x225   : > { %1835 = vrot.lane.b32.xlu0 %v3747_v53, %s3422_s19  ;;  %1628 = vrot.lane.b32.xlu1 %v3860_v21, %s3421_s6 }
 0x226   : > { %2077 = vrot.lane.b32.xlu2 %v3786_v20, %s3423_s25  ;;  %v4097_v41 = vpop.permute.xlu1 %1971 }
 0x228   : > { %3124 = vmatmul.msk.bf16.vlgmr.msra.gmra.mxu2 %vm1420_vm9, %v3968_v2  ;;  %v4076_v49 = vpop.permute.xlu2 %2205 }
 0x229   : > { %2184 = vmatpush.bf16.xpose.msrb.mxu2 %v2182_v39  ;;  %v1753_v39 = vsel %vm1420_vm9, %v3993_v57, 0  ;;  %v1750_v57 = vsel %vm1420_vm9, %v4068_v48, 0 }
 0x22d   : > { %1833 = vrot.lane.b32.xlu0 %v3736_v43, %s3422_s19  ;;  %1831 = vrot.lane.b32.xlu1 %v3725_v33, %s3422_s19 }
 0x22e   : > { %1638 = vrot.lane.b32.xlu2 %v3937_v51, %s3421_s6 }
 0x22f   : > { %v4088_v16 = vpop.permute.xlu0 %1975 }
 0x230   : > { %v2140_v56 = vpop.permute.xlu2 %2139 }
 0x231   : > { %2185 = vmatpush.bf16.xpose.msrb.mxu2 %v2179_v55  ;;  %v4156_v55 = vld [vmem:[%s4591_s18] ss:$0 sm:$0xff] }
 0x235   : > { %1878 = vrot.lane.b32.xlu0 %v3919_v31, %s3422_s19  ;;  %1829 = vrot.lane.b32.xlu1 %v3714_v22, %s3422_s19 }
 0x236   : > { %1880 = vrot.lane.b32.xlu2 %v3937_v51, %s3422_s19 }
 0x237   : > { %v4099_v61 = vpop.permute.xlu0 %2211 }
 0x238   : > { %v4101_v62 = vpop.permute.xlu2 %2197 }
 0x239   : > { %2186 = vmatpush.bf16.xpose.msrb.mxu2 %v2176_v54 }
 0x23d   : > { %1872 = vrot.lane.b32.xlu0 %v3876_v38, %s3422_s19  ;;  %1874 = vrot.lane.b32.xlu1 %v3892_v40, %s3422_s19 }
 0x23e   : > { %2067 = vrot.lane.b32.xlu2 %v3725_v33, %s3423_s25 }
 0x23f   : > { %v1742_v50 = vpop.permute.xlu1 %1741  ;;  %v2146_v1 = vpop.permute.xlu0 %2145 }
 0x240   : > { %v1598_v2 = vpop.permute.xlu2 %1597  ;;  %v1768_v4 = vsel %vm1420_vm9, %v1742_v50, 0  ;;  %v2167_v5 = vsel %vm1420_vm9, %v2146_v1, 0  ;;  %v4168_v50 = vadd.f32 %v4156_v55, %v4042_v34 }
 0x241   : > { %2187 = vmatpush.bf16.xpose.msrb.mxu2 %v2173_v59  ;;  %1770 = vmatpush.bf16.xpose.msrb.mxu3 %v1768_v4  ;;  %v1747_v4 = vsel %vm1420_vm9, %v4016_v23, 0 }
 0x245   : > { %1868 = vrot.lane.b32.xlu0 %v3842_v3, %s3422_s19  ;;  %2079 = vrot.lane.b32.xlu1 %v3799_v32, %s3423_s25 }
 0x247   : > { %v4117_v13 = vpop.permute.xlu1 %1963  ;;  %v2144_v6 = vpop.permute.xlu0 %2143 }
 0x248   : > { %v4119_v8 = vpop.permute.xlu2 %1636  ;;  %v2164_v14 = vsel %vm1420_vm9, %v2144_v6, 0 }
 0x249   : > { %2188 = vmatpush.bf16.xpose.msrb.mxu2 %v2170_v0  ;;  %1771 = vmatpush.bf16.xpose.msrb.mxu3 %v1765_v12  ;;  %v1998_v12 = vsel %vm1420_vm9, %v4026_v26, 0 }
 0x24d   : > { %2075 = vrot.lane.b32.xlu0 %v3773_v10, %s3423_s25  ;;  %1870 = vrot.lane.b32.xlu1 %v3860_v21, %s3422_s19 }
 0x24f   : > { %v4127_v15 = vpop.permute.xlu1 %1961  ;;  %v4140_v9 = vpop.permute.xlu0 %2203 }
 0x250   : > { %v4130_v17 = vpop.permute.xlu2 %1589 }
 0x251   : > { %2189 = vmatpush.bf16.xpose.msrb.mxu2 %v2167_v5  ;;  %1772 = vmatpush.bf16.xpose.msrb.mxu3 %v1762_v35 }
 0x255   : > { %1866 = vrot.lane.b32.xlu0 %v3823_v52, %s3422_s19  ;;  %s4603_s19 = scalar_lea.vmem %s4538_s11, %s3563_s28 }
 0x257   : > { %v2142_v19 = vpop.permute.xlu1 %2141  ;;  %v4151_v46 = vpop.permute.xlu0 %2199 }
 0x258   : > { %v2161_v24 = vsel %vm1420_vm9, %v2142_v19, 0  ;;  %v4136_v28 = vpop.permute.xlu2 %1634 }
 0x259   : > { %2190 = vmatpush.bf16.xpose.msrb.mxu2 %v2164_v14  ;;  %1773 = vmatpush.bf16.xpose.msrb.mxu3 %v1759_v60  ;;  %v1992_v60 = vsel %vm1420_vm9, %v4046_v36, 0 }
 0x25d   : > { %2073 = vrot.lane.b32.xlu0 %v3760_v63, %s3423_s25 }
 0x25f   : > { %v1978_v58 = vpop.permute.xlu1 %1977  ;;  %v1600_v59 = vpop.permute.xlu0 %1599 }
 0x260   : > { %v1588_v44 = vpop.permute.xlu2 %1587  ;;  %v2004_v48 = vsel %vm1420_vm9, %v1978_v58, 0 }
 0x261   : > { %2191 = vmatpush.bf16.xpose.msrb.mxu2 %v2161_v24  ;;  %1774 = vmatpush.bf16.xpose.msrb.mxu3 %v1756_v37 }
 0x265   : > { %2071 = vrot.lane.b32.xlu0 %v3747_v53, %s3423_s25 }
 0x267   : > { %v4147_v45 = vpop.permute.xlu1 %2201  ;;  %v1633_v14 = vpop.permute.xlu0 %1632 }
 0x268   : > { %3126 = vmatmul.msk.bf16.vlgmr.msrb.gmra.mxu2 %vm1420_vm9, %v2140_v56  ;;  %v1631_v56 = vpop.permute.xlu2 %1630 }
 0x269   : > { %1775 = vmatpush.bf16.xpose.msrb.mxu3 %v1753_v39 }
 0x26b   : > { %v1718_v25 = vpop.f32.mrf.mxu2 }
 0x26c   : > { %v4159_v27 = vadd.f32 %v4156_v55, %v1718_v25 }
 0x26d   : > { %2069 = vrot.lane.b32.xlu0 %v3736_v43, %s3423_s25 }
 0x26e   : > { %1783 = vmax.xlane.f32.xlu2 %v4159_v27 }
 0x26f   : > { %v1602_v54 = vpop.permute.xlu1 %1601  ;;  %v4201_v24 = vpop.permute.xlu0 %1841 }
 0x270   : > { %1611 = vmatpush.bf16.msrb.mxu0 %v1602_v54  ;;  %v4176_v5 = vpop.permute.xlu2 %1843 }
 0x271   : > { %1776 = vmatpush.bf16.xpose.msrb.mxu3 %v1750_v57 }
 0x273   : > { %v1720_v0 = vpop.f32.mrf.mxu2 }
 0x274   : > { %1612 = vmatpush.bf16.msrb.mxu0 %v1600_v59  ;;  %v2231_v59 = vsel %vm1420_vm9, %v4063_v47, 0 }
 0x275   : > { %2114 = vrot.lane.b32.xlu0 %v3919_v31, %s3423_s25 }
 0x277   : > { %v1596_v1 = vpop.permute.xlu1 %1595  ;;  %1541 = vmax.xlane.f32.xlu1 %v4168_v50  ;;  %v1627_v37 = vpop.permute.xlu0 %1626 }
 0x278   : > { %1613 = vmatpush.bf16.msrb.mxu0 %v1598_v2  ;;  %v2001_v2 = vsel %vm1420_vm9, %v4088_v16, 0  ;;  %v4184_v6 = vpop.permute.xlu2 %1876  ;;  %v1995_v16 = vsel %vm1420_vm9, %v4097_v41, 0  ;;  %v1989_v41 = vsel %vm1420_vm9, %v4012_v18, 0 }
 0x279   : > { %1777 = vmatpush.bf16.xpose.msrb.mxu3 %v1747_v4 }
 0x27c   : > { %1614 = vmatpush.bf16.msrb.mxu0 %v1596_v1 }
 0x27d   : > { %2112 = vrot.lane.b32.xlu0 %v3905_v11, %s3423_s25 }
 0x27f   : > { %v2214_v34 = vpop.permute.xlu1 %2213  ;;  %v4211_v39 = vpop.permute.xlu0 %1839 }
 0x280   : > { %3123 = vmatmul.msk.bf16.vlgmr.msrb.gmra.mxu3 %vm1420_vm9, %v3981_v42  ;;  %v4192_v42 = vpop.permute.xlu2 %2077  ;;  %v2240_v18 = vsel %vm1420_vm9, %v2214_v34, 0  ;;  %v2222_v34 = vsel %vm1420_vm9, %v4147_v45, 0 }
 0x281   : > { %2006 = vmatpush.bf16.xpose.msra.mxu3 %v2004_v48 }
 0x285   : > { %2065 = vrot.lane.b32.xlu0 %v3714_v22, %s3423_s25 }
 0x286   : > { %2108 = vrot.lane.b32.xlu2 %v3876_v38, %s3423_s25 }
 0x287   : > { %v1594_v23 = vpop.permute.xlu1 %1593 }
 0x288   : > { %1615 = vmatpush.bf16.msrb.mxu0 %v1594_v23  ;;  %v1639_v26 = vpop.permute.xlu2 %1638 }
 0x289   : > { %2007 = vmatpush.bf16.xpose.msra.mxu3 %v2001_v2 }
 0x28f   : > { %v1592_v35 = vpop.permute.xlu1 %1591 }
 0x290   : > { %2116 = vrot.lane.b32.xlu1 %v3937_v51, %s3423_s25  ;;  %1616 = vmatpush.bf16.msrb.mxu0 %v1592_v35 }
 0x291   : > { %2008 = vmatpush.bf16.xpose.msra.mxu3 %v1998_v12  ;;  %v4198_v19 = vpop.f32.mrf.mxu3 }
 0x294   : > { %1617 = vmatpush.bf16.msrb.mxu0 %v4130_v17 }
 0x297   : > { %v1629_v36 = vpop.permute.xlu1 %1628 }
 0x298   : > { %1618 = vmatpush.bf16.msrb.mxu0 %v1588_v44  ;;  %v1986_v44 = vsel %vm1420_vm9, %v4086_v7, 0  ;;  %v2237_v7 = vsel %vm1420_vm9, %v4099_v61, 0  ;;  %v2228_v61 = vsel %vm1420_vm9, %v4076_v49, 0 }
 0x299   : > { %2009 = vmatpush.bf16.xpose.msra.mxu3 %v1995_v16  ;;  %v1539_v58 = vpop.f32.mrf.mxu3 }
 0x29c   : > { %1648 = vmatpush.bf16.msra.mxu0 %v1639_v26 }
 0x2a0   : > { %1649 = vmatpush.bf16.msra.mxu0 %v4119_v8  ;;  %v1983_v8 = vsel %vm1420_vm9, %v4117_v13, 0  ;;  %v2234_v13 = vsel %vm1420_vm9, %v4040_v29, 0  ;;  %v2225_v29 = vsel %vm1420_vm9, %v4140_v9, 0  ;;  %v2219_v9 = vsel %vm1420_vm9, %v4151_v46, 0  ;;  %v3300_v46 = vld [vmem:[%s4591_s18 + $0x1] ss:$0 sm:$0xff] }
 0x2a1   : > { %2010 = vmatpush.bf16.xpose.msra.mxu3 %v1992_v60 }
 0x2a4   : > { %1650 = vmatpush.bf16.msra.mxu0 %v4136_v28  ;;  %v1625_v28 = vpop.permute.xlu0 %1624 }
 0x2a8   : > { %1651 = vmatpush.bf16.msra.mxu0 %v1633_v14 }
 0x2a9   : > { %2011 = vmatpush.bf16.xpose.msra.mxu3 %v1989_v41 }
 0x2ab   : > { %v1957_v17 = vpop.f32.mrf.mxu2 }
 0x2ac   : > { %1652 = vmatpush.bf16.msra.mxu0 %v1631_v56  ;;  %v1958_v54 = vadd.f32 %v4156_v55, %v1957_v17  ;;  %v4221_v56 = vpop.permute.xlu1 %1831  ;;  %v4241_v48 = vpop.permute.xlu0 %1837 }
 0x2b0   : > { %1653 = vmatpush.bf16.msra.mxu0 %v1629_v36 }
 0x2b1   : > { %2012 = vmatpush.bf16.xpose.msra.mxu3 %v1986_v44 }
 0x2b3   : > { %v1959_v25 = vpop.f32.mrf.mxu2 }
 0x2b4   : > { %1654 = vmatpush.bf16.msra.mxu0 %v1627_v37  ;;  %v4225_v57 = vpop.permute.xlu1 %1829  ;;  %v4248_v14 = vpop.permute.xlu0 %1835 }
 0x2b8   : > { %1655 = vmatpush.bf16.msra.mxu0 %v1625_v28 }
 0x2b9   : > { %2013 = vmatpush.bf16.xpose.msra.mxu3 %v1983_v8 }
 0x2ba   : > { %2019 = vmax.xlane.f32.xlu1 %v1958_v54 }
 0x2bc   : > { %v4229_v0 = vpop.permute.xlu1 %1874 }
 0x2c0   : > { %3125 = vmatmul.msk.bf16.vlgmr.msra.gmra.mxu3 %vm1420_vm9, %v4127_v15  ;;  %v4231_v15 = vpop.permute.xlu2 %1880 }
 0x2c1   : > { %2242 = vmatpush.bf16.xpose.msrb.mxu3 %v2240_v18 }
 0x2c4   : > { %v4235_v1 = vpop.permute.xlu1 %2079 }
 0x2c8   : > { %v4237_v4 = vpop.permute.xlu2 %2067 }
 0x2c9   : > { %2243 = vmatpush.bf16.xpose.msrb.mxu3 %v2237_v7 }
 0x2cc   : > { %v4245_v2 = vpop.permute.xlu1 %1870 }
 0x2d1   : > { %2244 = vmatpush.bf16.xpose.msrb.mxu3 %v2234_v13 }
 0x2d9   : > { %2245 = vmatpush.bf16.xpose.msrb.mxu3 %v2231_v59 }
 0x2e1   : > { %2246 = vmatpush.bf16.xpose.msrb.mxu3 %v2228_v61  ;;  %v1784_v47 = vpop.xlane.xlu2 %1783 }
 0x2e2   : > { %v1787_v23 = vsub.f32 %v4159_v27, %v1784_v47  ;;  %v4258_v27 = vpop.permute.xlu0 %1833 }
 0x2e4   : > { %v1789_v12 = vmul.f32 1.442695, %v1787_v23 }
 0x2e6   : > { %3312 = vpow2.f32 %v1789_v12 }
 0x2e9   : > { %2247 = vmatpush.bf16.xpose.msrb.mxu3 %v2225_v29 }
 0x2ea   : > { %v1542_v35 = vpop.xlane.xlu1 %1541  ;;  %v4264_v37 = vpop.permute.xlu0 %1878 }
 0x2eb   : > { %v2193_v49 = vpop.f32.mrf.mxu2  ;;  %v1545_v16 = vsub.f32 %v4168_v50, %v1542_v35  ;;  %v1538_v50 = vadd.f32 %v3300_v46, %v4198_v19 }
 0x2ec   : > { %v4253_v60 = vpop.eup %3312  ;;  %v4285_v59 = vadd.f32 %v4156_v55, %v2193_v49 }
 0x2ed   : > { %v1547_v45 = vmul.f32 1.442695, %v1545_v16  ;;  %1793 = vadd.xlane.f32.xlu1 %v4253_v60  ;;  %v4302_v16 = vpop.permute.xlu2 %2108 }
 0x2ee   : > { %4596 = vst [vmem:[#allocation14_spill] sm:$0xff] %v4302_v16 }
 0x2ef   : > { %3314 = vpow2.f32 %v1547_v45 }
 0x2f1   : > { %2248 = vmatpush.bf16.xpose.msrb.mxu3 %v2222_v34 }
 0x2f2   : > { %v4266_v44 = vpop.permute.xlu0 %1872 }
 0x2f3   : > { %v2195_v26 = vpop.f32.mrf.mxu2 }
 0x2f5   : > { %v3315_v58 = vpop.eup %3314 }
 0x2f6   : > { %1551 = vadd.xlane.f32.xlu0 %v3315_v58 }
 0x2f9   : > { %2249 = vmatpush.bf16.xpose.msrb.mxu3 %v2219_v9 }
 0x2fe   : > { %1543 = vmax.xlane.f32.xlu0 %v1538_v50 }
 0x300   : > { %3127 = vmatmul.msk.bf16.vlgmr.msrb.gmra.mxu3 %vm1420_vm9, %v4101_v62  ;;  %v4268_v62 = vpop.permute.xlu0 %1868 }
 0x302   : > { %v4278_v8 = vpop.permute.xlu1 %2116 }
 0x303   : > { %v1779_v41 = vpop.f32.mrf.mxu3  ;;  %4592 = vst [vmem:[#allocation10_spill] sm:$0xff] %v4278_v8 }
 0x304   : > { %v1780_v17 = vadd.f32 %v3300_v46, %v1779_v41 }
 0x306   : > { %1785 = vmax.xlane.f32.xlu2 %v1780_v17 }
 0x308   : > { %v4272_v25 = vpop.permute.xlu0 %2075 }
 0x30b   : > { %v1781_v36 = vpop.f32.mrf.mxu3 }
 0x310   : > { %v4276_v19 = vpop.permute.xlu0 %1866 }
 0x312   : > { %2110 = vrot.lane.b32.xlu0 %v3892_v40, %s3423_s25 }
 0x318   : > { %v4280_v18 = vpop.permute.xlu0 %2073 }
 0x31e   : > { %2106 = vrot.lane.b32.xlu2 %v3860_v21, %s3423_s25 }
 0x320   : > { %v4282_v13 = vpop.permute.xlu0 %2071 }
 0x328   : > { %v4288_v47 = vpop.permute.xlu0 %2069 }
 0x32d   : > { %v2020_v28 = vpop.xlane.xlu1 %2019 }
 0x32e   : > { %v2023_v7 = vsub.f32 %v1958_v54, %v2020_v28 }
 0x330   : > { %v2025_v61 = vmul.f32 1.442695, %v2023_v7  ;;  %v4293_v12 = vpop.permute.xlu0 %2114 }
 0x331   : > { %4593 = vst [vmem:[#allocation11_spill] sm:$0xff] %v4293_v12 }
 0x332   : > { %3316 = vpow2.f32 %v2025_v61 }
 0x338   : > { %v4290_v23 = vpop.eup %3316  ;;  %v4298_v55 = vpop.permute.xlu0 %2112 }
 0x339   : > { %4594 = vst [vmem:[#allocation12_spill] sm:$0xff] %v4298_v55 }
 0x33c   : > { %2255 = vmax.xlane.f32.xlu0 %v4285_v59 }
 0x340   : > { %v4300_v49 = vpop.permute.xlu0 %2065 }
 0x341   : > { %4595 = vst [vmem:[#allocation13_spill] sm:$0xff] %v4300_v49 }
 0x343   : > { %v2015_v29 = vpop.f32.mrf.mxu3 }
 0x344   : > { %v4295_v54 = vadd.f32 %v3300_v46, %v2015_v29 }
 0x347   : > { %2029 = vadd.xlane.f32.xlu2 %v4290_v23 }
 0x34b   : > { %v2017_v34 = vpop.f32.mrf.mxu3 }
 0x34f   : > { %2021 = vmax.xlane.f32.xlu2 %v4295_v54 }
 0x369   : > { %v1552_v9 = vpop.xlane.xlu0 %1551 }
 0x36a   : > { %3318 = vrcp.f32 %v1552_v9  ;;  %v1566_v28 = vand.u32 2147483648, %v1552_v9  ;;  %v1564_v34 = vand.u32 2147483647, %v1552_v9  ;;  %vm1560_vm11 = vweird.f32 %v1552_v9 }
 0x36c   : > { %v1567_v12 = vor.u32 1.1754944e-38, %v1566_v28  ;;  %vm1565_vm13 = vcmp.eq.f32.partialorder %v1564_v34, 8.507059e+37 }
 0x370   : > { %v3319_v35 = vpop.eup %3318 }
 0x371   : > { %v1556_v26 = vmul.f32 %v3319_v35, %v1552_v9  ;;  %v1544_v45 = vpop.xlane.xlu0 %1543  ;;  %vm1561_vm10 = vweird.f32 %v3319_v35 }
 0x372   : > { %v1546_v41 = vsub.f32 %v1538_v50, %v1544_v45  ;;  %vm1562_vm12 = vmor %vm1560_vm11, %vm1561_vm10 }
 0x373   : > { %v1557_v36 = vsub.f32 1.0, %v1556_v26 }
 0x374   : > { %v1549_v7 = vmul.f32 1.442695, %v1546_v41 }
 0x375   : > { %v1558_v61 = vmul.f32 %v3319_v35, %v1557_v36 }
 0x376   : > { %3320 = vpow2.f32 %v1549_v7 }
 0x377   : > { %v1559_v55 = vadd.f32 %v3319_v35, %v1558_v61 }
 0x379   : > { %v1786_v16 = vpop.xlane.xlu2 %1785  ;;  %v1563_v8 = vsel %vm1562_vm12, %v3319_v35, %v1559_v55 }
 0x37a   : > { %v1788_v50 = vsub.f32 %v1780_v17, %v1786_v16  ;;  %v1568_v26 = vsel %vm1565_vm13, %v1567_v12, %v1563_v8 }
 0x37b   : > { %v1583_v45 = vmul.f32 %v3315_v58, %v1568_v26 }
 0x37c   : > { %v4307_v41 = vpop.eup %3320  ;;  %v1791_v36 = vmul.f32 1.442695, %v1788_v50 }
 0x37d   : > { %1553 = vadd.xlane.f32.xlu0 %v4307_v41 }
 0x37e   : > { %3322 = vpow2.f32 %v1791_v36 }
 0x383   : > { %v2251_v29 = vpop.f32.mrf.mxu3 }
 0x384   : > { %v4304_v30 = vadd.f32 %v3300_v46, %v2251_v29  ;;  %v1585_v46 = vpack.c.bf16 %v1583_v45, %v1583_v45  ;;  %v4311_v9 = vpop.eup %3322 }
 0x385   : > { %1795 = vadd.xlane.f32.xlu2 %v4311_v9 }
 0x386   : > { %2257 = vmax.xlane.f32.xlu1 %v4304_v30  ;;  %1619 = vmatmul.bf16.vlgmr.msrb.gmra.mxu0 %v1585_v46 }
 0x387   : > { %1853 = vmatpush.bf16.msrb.mxu0 %v4176_v5 }
 0x38b   : > { %v2253_v49 = vpop.f32.mrf.mxu3  ;;  %1854 = vmatpush.bf16.msrb.mxu0 %v4201_v24 }
 0x38f   : > { %1855 = vmatpush.bf16.msrb.mxu0 %v4211_v39 }
 0x391   : > { %2315 = vrot.lane.b32.xlu0 %v3799_v32, %s3424_s20 }
 0x393   : > { %1856 = vmatpush.bf16.msrb.mxu0 %v4241_v48 }
 0x397   : > { %1857 = vmatpush.bf16.msrb.mxu0 %v4248_v14 }
 0x399   : > { %2313 = vrot.lane.b32.xlu0 %v3786_v20, %s3424_s20  ;;  %v4341_v20 = vpop.permute.xlu2 %2106 }
 0x39b   : > { %1858 = vmatpush.bf16.msrb.mxu0 %v4258_v27 }
 0x39d   : > { %2104 = vrot.lane.b32.xlu2 %v3842_v3, %s3423_s25 }
 0x39f   : > { %2309 = vrot.lane.b32.xlu1 %v3760_v63, %s3424_s20  ;;  %1859 = vmatpush.bf16.msrb.mxu0 %v4221_v56  ;;  %v4337_v63 = vpop.permute.xlu0 %2110 }
 0x3a1   : > { %2311 = vrot.lane.b32.xlu0 %v3773_v10, %s3424_s20 }
 0x3a3   : > { %1860 = vmatpush.bf16.msrb.mxu0 %v4225_v57 }
 0x3a7   : > { %2350 = vrot.lane.b32.xlu1 %v3919_v31, %s3424_s20 }
 0x3a9   : > { %2102 = vrot.lane.b32.xlu0 %v3823_v52, %s3423_s25  ;;  %s4608_s25 = sld [smem:[#allocation27_spill]] (!%p3178_p6) }
 0x3af   : > { %2348 = vrot.lane.b32.xlu1 %v3905_v11, %s3424_s20  ;;  %v2256_v32 = vpop.xlane.xlu0 %2255 }
 0x3b0   : > { %v2259_v31 = vsub.f32 %v4285_v59, %v2256_v32 }
 0x3b1   : > { %2307 = vrot.lane.b32.xlu0 %v3747_v53, %s3424_s20 }
 0x3b2   : > { %v2261_v5 = vmul.f32 1.442695, %v2259_v31 }
 0x3b4   : > { %3324 = vpow2.f32 %v2261_v5 }
 0x3b9   : > { %2352 = vrot.lane.b32.xlu0 %v3937_v51, %s3424_s20 }
 0x3ba   : > { %v4346_v11 = vpop.xlane.xlu2 %2029  ;;  %v4351_v39 = vpop.eup %3324 }
 0x3bb   : > { %vm2038_vm13 = vweird.f32 %v4346_v11 }
 0x3c1   : > { %2305 = vrot.lane.b32.xlu0 %v3736_v43, %s3424_s20  ;;  %v1794_v43 = vpop.xlane.xlu1 %1793 }
 0x3c2   : > { %v2022_v10 = vpop.xlane.xlu2 %2021  ;;  %v1808_v34 = vand.u32 2147483648, %v1794_v43  ;;  %vm1802_vm4 = vweird.f32 %v1794_v43  ;;  %v1806_v50 = vand.u32 2147483647, %v1794_v43 }
 0x3c3   : > { %v2024_v24 = vsub.f32 %v4295_v54, %v2022_v10 }
 0x3c4   : > { %v1809_v36 = vor.u32 1.1754944e-38, %v1808_v34  ;;  %vm1807_vm6 = vcmp.eq.f32.partialorder %v1806_v50, 8.507059e+37 }
 0x3c5   : > { %v2027_v53 = vmul.f32 1.442695, %v2024_v24 }
 0x3c6   : > { %2265 = vadd.xlane.f32.xlu2 %v4351_v39 }
 0x3c7   : > { %3326 = vpow2.f32 %v2027_v53 }
 0x3c8   : > { %3328 = vrcp.f32 %v1794_v43 }
 0x3c9   : > { %2303 = vrot.lane.b32.xlu0 %v3725_v33, %s3424_s20 }
 0x3cd   : > { %v4356_v51 = vpop.eup %3326 }
 0x3ce   : > { %v3329_v48 = vpop.eup %3328 }
 0x3cf   : > { %v1798_v27 = vmul.f32 %v3329_v48, %v1794_v43  ;;  %vm1803_vm3 = vweird.f32 %v3329_v48 }
 0x3d0   : > { %vm1804_vm5 = vmor %vm1802_vm4, %vm1803_vm3 }
 0x3d1   : > { %2301 = vrot.lane.b32.xlu0 %v3714_v22, %s3424_s20  ;;  %v1799_v59 = vsub.f32 1.0, %v1798_v27 }
 0x3d3   : > { %v1800_v35 = vmul.f32 %v3329_v48, %v1799_v59 }
 0x3d5   : > { %v1801_v61 = vadd.f32 %v3329_v48, %v1800_v35 }
 0x3d7   : > { %v1805_v45 = vsel %vm1804_vm5, %v3329_v48, %v1801_v61 }
 0x3d8   : > { %v1810_v46 = vsel %vm1807_vm6, %v1809_v36, %v1805_v45 }
 0x3d9   : > { %2031 = vadd.xlane.f32.xlu1 %v4356_v51  ;;  %2342 = vrot.lane.b32.xlu0 %v3860_v21, %s3424_s20  ;;  %v1825_v32 = vmul.f32 %v4253_v60, %v1810_v46 }
 0x3e1   : > { %2338 = vrot.lane.b32.xlu0 %v3823_v52, %s3424_s20 }
 0x3f0   : > { %v1554_v22 = vpop.xlane.xlu0 %1553 }
 0x3f1   : > { %v1580_v58 = vand.u32 2147483648, %v1554_v22  ;;  %vm1574_vm15 = vweird.f32 %v1554_v22 }
 0x3f2   : > { %2346 = vrot.lane.b32.xlu1 %v3892_v40, %s3424_s20 }
 0x3f3   : > { %v1581_v54 = vor.u32 1.1754944e-38, %v1580_v58 }
 0x3f8   : > { %v1796_v12 = vpop.xlane.xlu2 %1795 }
 0x3f9   : > { %v2258_v56 = vpop.xlane.xlu1 %2257  ;;  %v1822_v10 = vand.u32 2147483648, %v1796_v12  ;;  %vm1816_vm8 = vweird.f32 %v1796_v12 }
 0x3fa   : > { %v2260_v33 = vsub.f32 %v4304_v30, %v2258_v56  ;;  %2340 = vrot.lane.b32.xlu1 %v3842_v3, %s3424_s20  ;;  %v1578_v30 = vand.u32 2147483647, %v1554_v22 }
 0x3fc   : > { %v2263_v57 = vmul.f32 1.442695, %v2260_v33  ;;  %vm1579_vm2 = vcmp.eq.f32.partialorder %v1578_v30, 8.507059e+37  ;;  %v4600_v30 = vld [vmem:[#allocation12_spill] sm:$0xff] }
 0x3fe   : > { %3330 = vpow2.f32 %v2263_v57 }
 0x3ff   : > { %3332 = vrcp.f32 %v1554_v22 }
 0x400   : > { %3334 = vrcp.f32 %v1796_v12 }
 0x401   : > { %3336 = vrcp.f32 %v4346_v11 }
 0x403   : > { %v4373_v8 = vpop.f32.mrf.mxu0 }
 0x404   : > { %v4370_v21 = vpop.eup %3330 }
 0x405   : > { %v3333_v14 = vpop.eup %3332  ;;  %2267 = vadd.xlane.f32.xlu2 %v4370_v21 }
 0x406   : > { %v1570_v52 = vmul.f32 %v3333_v14, %v1554_v22  ;;  %vm1575_vm14 = vweird.f32 %v3333_v14  ;;  %v3335_v29 = vpop.eup %3334 }
 0x407   : > { %vm1576_vm0 = vmor %vm1574_vm15, %vm1575_vm14  ;;  %v1812_v26 = vmul.f32 %v3335_v29, %v1796_v12  ;;  %vm1817_vm7 = vweird.f32 %v3335_v29  ;;  %v3337_v60 = vpop.eup %3336 }
 0x408   : > { %v1571_v40 = vsub.f32 1.0, %v1570_v52  ;;  %vm1818_vm10 = vmor %vm1816_vm8, %vm1817_vm7  ;;  %v2034_v43 = vmul.f32 %v3337_v60, %v4346_v11  ;;  %vm2039_vm12 = vweird.f32 %v3337_v60  ;;  %v4597_v52 = vld [vmem:[#allocation13_spill] sm:$0xff] }
 0x409   : > { %vm2040_vm14 = vmor %vm2038_vm13, %vm2039_vm12 }
 0x40a   : > { %v1572_v17 = vmul.f32 %v3333_v14, %v1571_v40  ;;  %v2035_v56 = vsub.f32 1.0, %v2034_v43  ;;  %v4599_v40 = vld [vmem:[#allocation11_spill] sm:$0xff] }
 0x40b   : > { %v1622_v28 = vpop.f32.mrf.mxu0 }
 0x40c   : > { %v1573_v3 = vadd.f32 %v3333_v14, %v1572_v17 }
 0x40e   : > { %v1577_v55 = vsel %vm1576_vm0, %v3333_v14, %v1573_v3 }
 0x40f   : > { %v1582_v49 = vsel %vm1579_vm2, %v1581_v54, %v1577_v55  ;;  %v4601_v55 = vld [vmem:[#allocation14_spill] sm:$0xff] }
 0x410   : > { %v1584_v16 = vmul.f32 %v4307_v41, %v1582_v49  ;;  %v1813_v41 = vsub.f32 1.0, %v1812_v26 }
 0x411   : > { %v4390_v53 = vpop.permute.xlu1 %2309 }
 0x412   : > { %v1586_v7 = vpack.c.bf16 %v1584_v16, %v1584_v16  ;;  %v1814_v31 = vmul.f32 %v3335_v29, %v1813_v41 }
 0x414   : > { %1656 = vmatmul.bf16.vlgmr.msra.gmra.mxu0 %v1586_v7  ;;  %v1815_v5 = vadd.f32 %v3335_v29, %v1814_v31 }
 0x415   : > { %1890 = vmatpush.bf16.msra.mxu0 %v4231_v15  ;;  %v1827_v15 = vpack.c.bf16 %v1825_v32, %v1825_v32 }
 0x416   : > { %v1819_v24 = vsel %vm1818_vm10, %v3335_v29, %v1815_v5 }
 0x419   : > { %1891 = vmatpush.bf16.msra.mxu0 %v4264_v37  ;;  %v1820_v37 = vand.u32 2147483647, %v1796_v12  ;;  %v4395_v33 = vpop.permute.xlu1 %2350 }
 0x41b   : > { %vm1821_vm11 = vcmp.eq.f32.partialorder %v1820_v37, 8.507059e+37 }
 0x41d   : > { %1892 = vmatpush.bf16.msra.mxu0 %v4184_v6  ;;  %2344 = vrot.lane.b32.xlu2 %v3876_v38, %s3424_s20  ;;  %v1823_v6 = vor.u32 1.1754944e-38, %v1822_v10 }
 0x41f   : > { %v1824_v38 = vsel %vm1821_vm11, %v1823_v6, %v1819_v24 }
 0x421   : > { %1893 = vmatpush.bf16.msra.mxu0 %v4229_v0  ;;  %v1826_v0 = vmul.f32 %v4311_v9, %v1824_v38  ;;  %v2044_v9 = vand.u32 2147483648, %v4346_v11 }
 0x423   : > { %v2045_v22 = vor.u32 1.1754944e-38, %v2044_v9 }
 0x424   : > { %1861 = vmatmul.bf16.vlgmr.msrb.gmra.mxu0 %v1827_v15 }
 0x425   : > { %1894 = vmatpush.bf16.msra.mxu0 %v4266_v44  ;;  %v1828_v44 = vpack.c.bf16 %v1826_v0, %v1826_v0 }
 0x429   : > { %1895 = vmatpush.bf16.msra.mxu0 %v4245_v2  ;;  %v2316_v2 = vpop.permute.xlu0 %2315 }
 0x42d   : > { %1896 = vmatpush.bf16.msra.mxu0 %v4268_v62  ;;  %v2036_v62 = vmul.f32 %v3337_v60, %v2035_v56 }
 0x431   : > { %1897 = vmatpush.bf16.msra.mxu0 %v4276_v19  ;;  %v2037_v19 = vadd.f32 %v3337_v60, %v2036_v62 }
 0x433   : > { %v2041_v57 = vsel %vm2040_vm14, %v3337_v60, %v2037_v19  ;;  %vm2401_vm14 = vcmask 130048  }
 0x434   : > { %1898 = vmatmul.bf16.vlgmr.msra.gmra.mxu0 %v1828_v44 }
 0x435   : > { %2089 = vmatpush.bf16.msrb.mxu0 %v4235_v1  ;;  %v2314_v1 = vpop.permute.xlu0 %2313 }
 0x439   : > { %2090 = vmatpush.bf16.msrb.mxu0 %v4192_v42  ;;  %v2042_v42 = vand.u32 2147483647, %v4346_v11 }
 0x43b   : > { %vm2043_vm15 = vcmp.eq.f32.partialorder %v2042_v42, 8.507059e+37 }
 0x43d   : > { %2091 = vmatpush.bf16.msrb.mxu0 %v4272_v25  ;;  %v4403_v25 = vpop.permute.xlu1 %2348  ;;  %v2312_v48 = vpop.permute.xlu0 %2311 }
 0x441   : > { %2092 = vmatpush.bf16.msrb.mxu0 %v4280_v18  ;;  %v2046_v18 = vsel %vm2043_vm15, %v2045_v22, %v2041_v57  ;;  %vm2404_vm15 = vcmask 195584  }
 0x442   : > { %v2061_v14 = vmul.f32 %v4290_v23, %v2046_v18 }
 0x444   : > { %v2063_v11 = vpack.c.bf16 %v2061_v14, %v2061_v14 }
 0x445   : > { %2093 = vmatpush.bf16.msrb.mxu0 %v4282_v13  ;;  %v4598_v13 = vld [vmem:[#allocation10_spill] sm:$0xff] }
 0x449   : > { %2094 = vmatpush.bf16.msrb.mxu0 %v4288_v47  ;;  %v2103_v47 = vpop.permute.xlu0 %2102 }
 0x44c   : > { %v2032_v27 = vpop.xlane.xlu1 %2031 }
 0x44d   : > { %2095 = vmatpush.bf16.msrb.mxu0 %v4237_v4  ;;  %3338 = vrcp.f32 %v2032_v27  ;;  %v2105_v4 = vpop.permute.xlu2 %2104  ;;  %v2058_v54 = vand.u32 2147483648, %v2032_v27  ;;  %vm2052_vm2 = vweird.f32 %v2032_v27  ;;  %v2056_v49 = vand.u32 2147483647, %v2032_v27 }
 0x44f   : > { %v2059_v28 = vor.u32 1.1754944e-38, %v2058_v54  ;;  %vm2057_vm4 = vcmp.eq.f32.partialorder %v2056_v49, 8.507059e+37 }
 0x451   : > { %2096 = vmatpush.bf16.msrb.mxu0 %v4597_v52  ;;  %v2308_v12 = vpop.permute.xlu0 %2307 }
 0x453   : > { %v3339_v58 = vpop.eup %3338 }
 0x454   : > { %2097 = vmatmul.bf16.vlgmr.msrb.gmra.mxu0 %v2063_v11  ;;  %v2048_v17 = vmul.f32 %v3339_v58, %v2032_v27  ;;  %vm2053_vm0 = vweird.f32 %v3339_v58 }
 0x455   : > { %2126 = vmatpush.bf16.msra.mxu0 %v4598_v13  ;;  %vm2054_vm3 = vmor %vm2052_vm2, %vm2053_vm0  ;;  %v2266_v16 = vpop.xlane.xlu2 %2265 }
 0x456   : > { %v2049_v59 = vsub.f32 1.0, %v2048_v17  ;;  %3340 = vrcp.f32 %v2266_v16  ;;  %v2280_v46 = vand.u32 2147483648, %v2266_v16  ;;  %vm2274_vm6 = vweird.f32 %v2266_v16 }
 0x458   : > { %v2050_v3 = vmul.f32 %v3339_v58, %v2049_v59  ;;  %v2281_v31 = vor.u32 1.1754944e-38, %v2280_v46  ;;  %v3233_v46 = vld [vmem:[%s3622_s3 + $0x30] sm:$0xff] }
 0x459   : > { %2127 = vmatpush.bf16.msra.mxu0 %v4599_v40  ;;  %v2353_v61 = vpop.permute.xlu0 %2352 }
 0x45a   : > { %v2051_v23 = vadd.f32 %v3339_v58, %v2050_v3  ;;  %v3224_v3 = vld [vmem:[%s3596_s27 + $0x8] sm:$0xff] }
 0x45b   : > { %2433 = vmatpush.bf16.msra.mxu2 %v3224_v3 }
 0x45c   : > { %v2055_v35 = vsel %vm2054_vm3, %v3339_v58, %v2051_v23  ;;  %v3341_v29 = vpop.eup %3340  ;;  %v3223_v23 = vld [vmem:[%s3596_s27] sm:$0xff] }
 0x45d   : > { %2128 = vmatpush.bf16.msra.mxu0 %v4600_v30  ;;  %v2060_v7 = vsel %vm2057_vm4, %v2059_v28, %v2055_v35  ;;  %v2270_v50 = vmul.f32 %v3341_v29, %v2266_v16  ;;  %vm2275_vm5 = vweird.f32 %v3341_v29 }
 0x45e   : > { %vm2276_vm7 = vmor %vm2274_vm6, %vm2275_vm5 }
 0x45f   : > { %v2271_v45 = vsub.f32 1.0, %v2270_v50  ;;  %2434 = vmatpush.bf16.msra.mxu2 %v3223_v23 }
 0x461   : > { %2129 = vmatpush.bf16.msra.mxu0 %v4337_v63  ;;  %v2062_v63 = vmul.f32 %v4356_v51, %v2060_v7  ;;  %v2306_v26 = vpop.permute.xlu0 %2305  ;;  %v2272_v36 = vmul.f32 %v3341_v29, %v2271_v45  ;;  %v2278_v51 = vand.u32 2147483647, %v2266_v16 }
 0x463   : > { %v2064_v34 = vpack.c.bf16 %v2062_v63, %v2062_v63  ;;  %vm2279_vm8 = vcmp.eq.f32.partialorder %v2278_v51, 8.507059e+37  ;;  %v3301_v51 = vld [vmem:[%s909_s21] ss:$0 sm:$0xff]  ;;  %s4607_s21 = sld [smem:[#allocation25_spill]] (!%p3178_p6) }
 0x464   : > { %v2347_v44 = vpop.permute.xlu1 %2346 }
 0x465   : > { %2130 = vmatpush.bf16.msra.mxu0 %v4601_v55 }
 0x469   : > { %2131 = vmatpush.bf16.msra.mxu0 %v4341_v20  ;;  %v2273_v20 = vadd.f32 %v3341_v29, %v2272_v36  ;;  %v2304_v41 = vpop.permute.xlu0 %2303 }
 0x46b   : > { %v2277_v32 = vsel %vm2276_vm7, %v3341_v29, %v2273_v20  ;;  %v3234_v20 = vld [vmem:[%s3622_s3 + $0x38] sm:$0xff] }
 0x46c   : > { %v2282_v5 = vsel %vm2279_vm8, %v2281_v31, %v2277_v32  ;;  %v2341_v42 = vpop.permute.xlu1 %2340  ;;  %2632 = vmatpush.bf16.msrb.mxu1 %v3234_v20 }
 0x46d   : > { %2132 = vmatpush.bf16.msra.mxu0 %v2105_v4  ;;  %v2297_v10 = vmul.f32 %v4351_v39, %v2282_v5 }
 0x46f   : > { %v2299_v6 = vpack.c.bf16 %v2297_v10, %v2297_v10 }
 0x470   : > { %2633 = vmatpush.bf16.msrb.mxu1 %v3233_v46 }
 0x471   : > { %2133 = vmatpush.bf16.msra.mxu0 %v2103_v47  ;;  %v2302_v37 = vpop.permute.xlu0 %2301 }
 0x474   : > { %2134 = vmatmul.bf16.vlgmr.msra.gmra.mxu0 %v2064_v34 }
 0x475   : > { %2325 = vmatpush.bf16.msrb.mxu0 %v2316_v2 }
 0x478   : > { %v2268_v15 = vpop.xlane.xlu2 %2267 }
 0x479   : > { %2326 = vmatpush.bf16.msrb.mxu0 %v2314_v1  ;;  %3342 = vrcp.f32 %v2268_v15  ;;  %v2294_v39 = vand.u32 2147483648, %v2268_v15  ;;  %v2343_v62 = vpop.permute.xlu0 %2342  ;;  %vm2288_vm11 = vweird.f32 %v2268_v15  ;;  %v2292_v19 = vand.u32 2147483647, %v2268_v15 }
 0x47b   : > { %v2295_v9 = vor.u32 1.1754944e-38, %v2294_v39  ;;  %vm2293_vm13 = vcmp.eq.f32.partialorder %v2292_v19, 8.507059e+37 }
 0x47d   : > { %2327 = vmatpush.bf16.msrb.mxu0 %v2312_v48 }
 0x47f   : > { %v3343_v24 = vpop.eup %3342 }
 0x480   : > { %v2284_v38 = vmul.f32 %v3343_v24, %v2268_v15  ;;  %vm2289_vm10 = vweird.f32 %v3343_v24  ;;  %v2345_v2 = vpop.permute.xlu2 %2344 }
 0x481   : > { %2328 = vmatpush.bf16.msrb.mxu0 %v4390_v53  ;;  %vm2290_vm12 = vmor %vm2288_vm11, %vm2289_vm10 }
 0x482   : > { %v2285_v0 = vsub.f32 1.0, %v2284_v38 }
 0x484   : > { %v2286_v53 = vmul.f32 %v3343_v24, %v2285_v0 }
 0x485   : > { %2329 = vmatpush.bf16.msrb.mxu0 %v2308_v12 }
 0x486   : > { %v2287_v43 = vadd.f32 %v3343_v24, %v2286_v53 }
 0x488   : > { %v2291_v1 = vsel %vm2290_vm12, %v3343_v24, %v2287_v43  ;;  %v3353_v24 = vld [vmem:[#allocation2 + $0x8] sm:$0xff]  ;;  %v4602_v43 = vld [vmem:[#allocation9_spill] sm:$0xff] }
 0x489   : > { %2330 = vmatpush.bf16.msrb.mxu0 %v2306_v26 }
 0x48d   : > { %2331 = vmatpush.bf16.msrb.mxu0 %v2304_v41 }
 0x491   : > { %2332 = vmatpush.bf16.msrb.mxu0 %v2302_v37  ;;  %v1657_v60 = vpop.f32.mrf.mxu0 }
 0x494   : > { %2333 = vmatmul.bf16.vlgmr.msrb.gmra.mxu0 %v2299_v6 }
 0x495   : > { %2362 = vmatpush.bf16.msra.mxu0 %v2353_v61 }
 0x499   : > { %2363 = vmatpush.bf16.msra.mxu0 %v4395_v33  ;;  %v1659_v56 = vpop.f32.mrf.mxu0  ;;  %v2296_v33 = vsel %vm2293_vm13, %v2295_v9, %v2291_v1  ;;  %v3226_v1 = vld [vmem:[%s3613_s4 + $0x8] sm:$0xff] }
 0x49a   : > { %v2298_v22 = vmul.f32 %v4370_v21, %v2296_v33  ;;  %2541 = vmatpush.bf16.msra.mxu3 %v3226_v1 }
 0x49c   : > { %v2300_v18 = vpack.c.bf16 %v2298_v22, %v2298_v22 }
 0x49d   : > { %2364 = vmatpush.bf16.msra.mxu0 %v4403_v25  ;;  %v2339_v25 = vpop.permute.xlu0 %2338 }
 0x4a1   : > { %2365 = vmatpush.bf16.msra.mxu0 %v2347_v44  ;;  %v1862_v57 = vpop.f32.mrf.mxu0 }
 0x4a5   : > { %2366 = vmatpush.bf16.msra.mxu0 %v2345_v2 }
 0x4a9   : > { %2367 = vmatpush.bf16.msra.mxu0 %v2343_v62  ;;  %v1864_v48 = vpop.f32.mrf.mxu0 }
 0x4ad   : > { %2368 = vmatpush.bf16.msra.mxu0 %v2341_v42  ;;  %v3232_v42 = vld [vmem:[%s3622_s3 + $0x28] sm:$0xff] }
 0x4ae   : > { %2634 = vmatpush.bf16.msrb.mxu1 %v3232_v42 }
 0x4b1   : > { %2369 = vmatpush.bf16.msra.mxu0 %v2339_v25  ;;  %v1899_v14 = vpop.f32.mrf.mxu0 }
 0x4b2   : > { %v3280_v52 = vpack.i.bf16 %v1899_v14, %v1862_v57  ;;  %v3225_v57 = vld [vmem:[%s3613_s4] sm:$0xff] }
 0x4b3   : > { %2542 = vmatpush.bf16.msra.mxu3 %v3225_v57 }
 0x4b4   : > { %2370 = vmatmul.bf16.vlgmr.msra.gmra.mxu0 %v2300_v18  ;;  %3281 = vrot.lane.b32.xlu1 %v3280_v52, %s3425_s23 }
 0x4b9   : > { %v1901_v13 = vpop.f32.mrf.mxu0 }
 0x4ba   : > { %v3231_v13 = vld [vmem:[%s3622_s3 + $0x20] sm:$0xff] }
 0x4bb   : > { %2635 = vmatpush.bf16.msrb.mxu1 %v3231_v13 }
 0x4d1   : > { %v2098_v27 = vpop.f32.mrf.mxu0 }
 0x4d9   : > { %v2100_v11 = vpop.f32.mrf.mxu0 }
 0x4da   : > { %v3230_v11 = vld [vmem:[%s3622_s3 + $0x18] sm:$0xff] }
 0x4db   : > { %2636 = vmatpush.bf16.msrb.mxu1 %v3230_v11 }
 0x4f1   : > { %v2135_v40 = vpop.f32.mrf.mxu0 }
 0x4f2   : > { %v3285_v47 = vpack.i.bf16 %v2135_v40, %v2098_v27 }
 0x4f4   : > { %3286 = vrot.lane.b32.xlu0 %v3285_v47, %s3426_s29 }
 0x4f9   : > { %v2137_v21 = vpop.f32.mrf.mxu0 }
 0x511   : > { %v2334_v58 = vpop.f32.mrf.mxu0 }
 0x519   : > { %v2336_v17 = vpop.f32.mrf.mxu0 }
 0x51a   : > { %v3229_v17 = vld [vmem:[%s3622_s3 + $0x10] sm:$0xff] }
 0x51b   : > { %2637 = vmatpush.bf16.msrb.mxu1 %v3229_v17 }
 0x526   : > { %v3282_v12 = vpop.permute.xlu1 %3281 }
 0x527   : > { %v3284_v55 = vunpack.i.h.bf16 %v3282_v12  ;;  %v3283_v49 = vunpack.i.l.bf16 %v3282_v12 }
 0x529   : > { %v2400_v7 = vsel %vm1420_vm9, %v1657_v60, %v3284_v55  ;;  %v2399_v63 = vsel %vm1420_vm9, %v4373_v8, %v3283_v49  ;;  %v3352_v8 = vld [vmem:[#allocation2] sm:$0xff] }
 0x531   : > { %v2371_v30 = vpop.f32.mrf.mxu0 }
 0x532   : > { %v3290_v59 = vpack.i.bf16 %v2371_v30, %v2334_v58 }
 0x534   : > { %3291 = vrot.lane.b32.xlu1 %v3290_v59, %s3427_s26  ;;  %s4606_s26 = sld [smem:[#allocation24_spill]] (!%p3178_p6) }
 0x539   : > { %v2373_v4 = vpop.f32.mrf.mxu0 }
 0x53a   : > { %v3228_v4 = vld [vmem:[%s3622_s3 + $0x8] sm:$0xff] }
 0x53b   : > { %2638 = vmatpush.bf16.msrb.mxu1 %v3228_v4 }
 0x566   : > { %v3287_v54 = vpop.permute.xlu0 %3286 }
 0x567   : > { %v3289_v35 = vunpack.i.h.bf16 %v3287_v54  ;;  %v3288_v16 = vunpack.i.l.bf16 %v3287_v54 }
 0x569   : > { %v2403_v34 = vsel %vm2401_vm14, %v2400_v7, %v3289_v35  ;;  %v2402_v50 = vsel %vm2401_vm14, %v2399_v63, %v3288_v16 }
 0x5a6   : > { %v3292_v28 = vpop.permute.xlu1 %3291 }
 0x5a7   : > { %v3294_v61 = vunpack.i.h.bf16 %v3292_v28  ;;  %v3293_v29 = vunpack.i.l.bf16 %v3292_v28  ;;  %v3302_v28 = vld [vmem:[%s4603_s19] ss:$0 sm:$0xff] }
 0x5a9   : > { %v2405_v26 = vsel %vm2404_vm15, %v2402_v50, %v3293_v29  ;;  %v2406_v45 = vsel %vm2404_vm15, %v2403_v34, %v3294_v61 }
 0x5aa   : > { %v2407_v36 = vpack.c.bf16 %v2406_v45, %v2405_v26  ;;  %v3303_v26 = vld [vmem:[%s915_s7] ss:$0 sm:$0xff] }
 0x5ac   : > { %3136 = vmatmul.msk.bf16.vlgmr.msra.gmra.mxu2 %vm981_vm1, %v2407_v36 }
 0x62f   : > { %v2436_v41 = vpop.f32.mrf.mxu2 }
 0x630   : > { %v2441_v32 = vadd.f32 %v3352_v8, %v2436_v41  ;;  %v3304_v41 = vld [vmem:[%s923_s5] ss:$0 sm:$0xff] }
 0x632   : > { %v4434_v31 = vadd.f32 %v3301_v51, %v2441_v32 }
 0x634   : > { %v2451_v15 = vsel %vm981_vm1, %v4434_v31, 0.0  ;;  %v2459_v5 = vmul.f32 %v4434_v31, %v4434_v31 }
 0x635   : > { %2452 = vadd.xlane.f32.xlu2 %v2451_v15 }
 0x636   : > { %v2461_v10 = vsel %vm981_vm1, %v2459_v5, 0.0 }
 0x637   : > { %2462 = vadd.xlane.f32.xlu1 %v2461_v10  ;;  %v2438_v37 = vpop.f32.mrf.mxu2 }
 0x638   : > { %v2442_v6 = vadd.f32 %v3353_v24, %v2438_v37 }
 0x63a   : > { %v4441_v38 = vadd.f32 %v3301_v51, %v2442_v6  ;;  %v3227_v51 = vld [vmem:[%s3622_s3] sm:$0xff] }
 0x63b   : > { %2639 = vmatpush.bf16.msrb.mxu1 %v3227_v51 }
 0x63c   : > { %v2454_v0 = vsel %vm981_vm1, %v4441_v38, 0.0  ;;  %v2460_v60 = vmul.f32 %v4441_v38, %v4441_v38 }
 0x63d   : > { %2455 = vadd.xlane.f32.xlu0 %v2454_v0 }
 0x63e   : > { %v2464_v44 = vsel %vm981_vm1, %v2460_v60, 0.0 }
 0x63f   : > { %2465 = vadd.xlane.f32.xlu2 %v2464_v44 }
 0x6a8   : > { %v2453_v53 = vpop.xlane.xlu2 %2452 }
 0x6a9   : > { %v2457_v2 = vmul.f32 %v2453_v53, %v4602_v43 }
 0x6aa   : > { %v2463_v39 = vpop.xlane.xlu1 %2462 }
 0x6ab   : > { %v2469_v56 = vmul.f32 %v2457_v2, %v2457_v2  ;;  %v2467_v62 = vmul.f32 %v2463_v39, %v4602_v43  ;;  %v2497_v35 = vsub.f32 %v4434_v31, %v2457_v2 }
 0x6ad   : > { %v2471_v19 = vsub.f32 %v2467_v62, %v2469_v56 }
 0x6af   : > { %v2473_v9 = vmax.f32 %v2471_v19, 0.0 }
 0x6b0   : > { %v2456_v33 = vpop.xlane.xlu0 %2455 }
 0x6b1   : > { %v2475_v22 = vadd.f32 1e-05, %v2473_v9  ;;  %v2458_v25 = vmul.f32 %v2456_v33, %v4602_v43 }
 0x6b2   : > { %v2466_v18 = vpop.xlane.xlu2 %2465 }
 0x6b3   : > { %3344 = vrsqrt.f32 %v2475_v22  ;;  %v2470_v48 = vmul.f32 %v2458_v25, %v2458_v25  ;;  %v2468_v14 = vmul.f32 %v2466_v18, %v4602_v43  ;;  %vm2483_vm0 = vweird.f32 %v2475_v22 }
 0x6b4   : > { %v2498_v61 = vsub.f32 %v4441_v38, %v2458_v25 }
 0x6b5   : > { %v2472_v52 = vsub.f32 %v2468_v14, %v2470_v48 }
 0x6b7   : > { %v2474_v27 = vmax.f32 %v2472_v52, 0.0 }
 0x6b9   : > { %v3345_v40 = vpop.eup %3344  ;;  %v2476_v21 = vadd.f32 1e-05, %v2474_v27 }
 0x6ba   : > { %v2478_v47 = vmul.f32 %v3345_v40, %v2475_v22  ;;  %vm2484_vm9 = vweird.f32 %v3345_v40  ;;  %v3305_v22 = vld [vmem:[%s931_s1] ss:$0 sm:$0xff]  ;;  %s4605_s1 = sld [smem:[#allocation26_spill]] (!%p3178_p6) }
 0x6bb   : > { %3346 = vrsqrt.f32 %v2476_v21  ;;  %vm2485_vm2 = vmor %vm2483_vm0, %vm2484_vm9  ;;  %vm2493_vm4 = vweird.f32 %v2476_v21 }
 0x6bc   : > { %v2479_v58 = vmul.f32 %v3345_v40, %v2478_v47 }
 0x6be   : > { %v2480_v30 = vmul.f32 0.5, %v2479_v58 }
 0x6c0   : > { %v2481_v59 = vsub.f32 1.5, %v2480_v30 }
 0x6c1   : > { %v3347_v3 = vpop.eup %3346 }
 0x6c2   : > { %v2482_v23 = vmul.f32 %v3345_v40, %v2481_v59  ;;  %v2488_v12 = vmul.f32 %v3347_v3, %v2476_v21  ;;  %vm2494_vm3 = vweird.f32 %v3347_v3 }
 0x6c3   : > { %vm2495_vm5 = vmor %vm2493_vm4, %vm2494_vm3 }
 0x6c4   : > { %v2489_v54 = vmul.f32 %v3347_v3, %v2488_v12  ;;  %v2486_v55 = vsel %vm2485_vm2, %v3345_v40, %v2482_v23 }
 0x6c5   : > { %v2499_v7 = vmul.f32 %v2497_v35, %v2486_v55 }
 0x6c6   : > { %v2490_v49 = vmul.f32 0.5, %v2489_v54 }
 0x6c7   : > { %v2504_v34 = vmul.f32 %v3302_v28, %v2499_v7 }
 0x6c8   : > { %v2491_v16 = vsub.f32 1.5, %v2490_v49 }
 0x6c9   : > { %v2509_v36 = vadd.f32 %v3303_v26, %v2504_v34 }
 0x6ca   : > { %v2492_v63 = vmul.f32 %v3347_v3, %v2491_v16 }
 0x6cc   : > { %v2496_v29 = vsel %vm2495_vm5, %v3347_v3, %v2492_v63 }
 0x6cd   : > { %v2500_v50 = vmul.f32 %v2498_v61, %v2496_v29 }
 0x6cf   : > { %v2505_v45 = vmul.f32 %v3302_v28, %v2500_v50 }
 0x6d1   : > { %v2510_v20 = vadd.f32 %v3303_v26, %v2505_v45 }
 0x6d3   : > { %v2511_v46 = vpack.c.bf16 %v2510_v20, %v2509_v36 }
 0x6d5   : > { %3145 = vmatmul.msk.bf16.vlgmr.msra.gmra.mxu3 %vm981_vm1, %v2511_v46 }
 0x758   : > { %v2544_v8 = vpop.f32.mrf.mxu3 }
 0x759   : > { %v2545_v32 = vadd.f32 %v3304_v41, %v2544_v8 }
 0x75b   : > { %v2549_v15 = vmul.f32 %v2545_v32, %v2545_v32 }
 0x75d   : > { %v2551_v5 = vmul.f32 %v2549_v15, %v2545_v32 }
 0x75f   : > { %v2553_v10 = vmul.f32 0.044715, %v2551_v5 }
 0x760   : > { %v2546_v37 = vpop.f32.mrf.mxu3 }
 0x761   : > { %v2555_v24 = vadd.f32 %v2553_v10, %v2545_v32  ;;  %v2547_v6 = vadd.f32 %v3304_v41, %v2546_v37 }
 0x763   : > { %v2557_v0 = vmul.f32 0.7978846, %v2555_v24  ;;  %v2550_v60 = vmul.f32 %v2547_v6, %v2547_v6 }
 0x765   : > { %v2552_v44 = vmul.f32 %v2550_v60, %v2547_v6  ;;  %3348 = vtanh.f32 %v2557_v0 }
 0x767   : > { %v2554_v53 = vmul.f32 0.044715, %v2552_v44 }
 0x769   : > { %v2556_v43 = vadd.f32 %v2554_v53, %v2547_v6 }
 0x76b   : > { %v2558_v2 = vmul.f32 0.7978846, %v2556_v43  ;;  %v3349_v39 = vpop.eup %3348 }
 0x76c   : > { %v2561_v56 = vadd.f32 1.0, %v3349_v39 }
 0x76d   : > { %3350 = vtanh.f32 %v2558_v2 }
 0x76e   : > { %v2563_v19 = vmul.f32 0.5, %v2561_v56 }
 0x770   : > { %v2565_v33 = vmul.f32 %v2563_v19, %v2545_v32 }
 0x773   : > { %v3351_v62 = vpop.eup %3350 }
 0x774   : > { %v2562_v1 = vadd.f32 1.0, %v3351_v62 }
 0x776   : > { %v2564_v9 = vmul.f32 0.5, %v2562_v1 }
 0x778   : > { %v2566_v42 = vmul.f32 %v2564_v9, %v2547_v6 }
 0x77a   : > { %v2567_v57 = vpack.c.bf16 %v2566_v42, %v2565_v33 }
 0x77c   : > { %2640 = vmatmul.bf16.vlgmr.msrb.gmra.mxu1 %v2567_v57 }
 0x7f9   : > { %v2641_v25 = vpop.f32.mrf.mxu1 }
 0x7fa   : > { %v2646_v18 = vadd.f32 %v2641_v25, %v4434_v31 }
 0x7fc   : > { %v2652_v48 = vadd.f32 %v3305_v22, %v2646_v18 }
 0x7fe   : > { %2654 = vst.msk [vmem:[#allocation2] sm:$0xff] %vm981_vm1, %v2652_v48 }
 0x801   : > { %v2643_v14 = vpop.f32.mrf.mxu1 }
 0x802   : > { %v2647_v52 = vadd.f32 %v2643_v14, %v4441_v38  ;;  %2659 = sbr.rel (%p3178_p6) target bundleno = 2353 (0x931), region = 112 }
 0x804   : > { %v2653_v13 = vadd.f32 %v3305_v22, %v2647_v52 }
 0x806   : > { %2655 = vst.msk [vmem:[#allocation2 + $0x8] sm:$0xff] %vm981_vm1, %v2653_v13 }
 0x807   : > { %v2662_v27 = vsel %vm981_vm1, %v2652_v48, 0.0  ;;  %v2670_v11 = vmul.f32 %v2652_v48, %v2652_v48  ;;  %v2671_v31 = vmul.f32 %v2653_v13, %v2653_v13  ;;  %v2665_v47 = vsel %vm981_vm1, %v2653_v13, 0.0  ;;  %v4604_v58 = vld [vmem:[#allocation9_spill] sm:$0xff]  ;;  %v3236_v3 = vld [vmem:[%s4605_s1 + $0x8] sm:$0xff] }
 0x808   : > { %2663 = vadd.xlane.f32.xlu0 %v2662_v27  ;;  %2752 = vmatpush.bf16.msra.mxu0 %v3236_v3  ;;  %v3235_v12 = vld [vmem:[%s4605_s1] sm:$0xff] }
 0x809   : > { %v2672_v40 = vsel %vm981_vm1, %v2670_v11, 0.0  ;;  %v2675_v21 = vsel %vm981_vm1, %v2671_v31, 0.0  ;;  %v3354_v37 = vld [vmem:[%s4606_s26] ss:$0 sm:$0xff] }
 0x80a   : > { %2673 = vadd.xlane.f32.xlu1 %v2672_v40  ;;  %v3355_v53 = vld [vmem:[%s4607_s21] ss:$0 sm:$0xff] }
 0x80b   : > { %v3356_v62 = vld [vmem:[%s4608_s25] ss:$0 sm:$0xff] }
 0x80c   : > { %2753 = vmatpush.bf16.msra.mxu0 %v3235_v12 }
 0x810   : > { %2666 = vadd.xlane.f32.xlu0 %v2665_v47 }
 0x812   : > { %2676 = vadd.xlane.f32.xlu1 %v2675_v21 }
 0x87b   : > { %v2664_v38 = vpop.xlane.xlu0 %2663 }
 0x87c   : > { %v2668_v17 = vmul.f32 %v2664_v38, %v4604_v58 }
 0x87d   : > { %v2674_v30 = vpop.xlane.xlu1 %2673 }
 0x87e   : > { %v2680_v59 = vmul.f32 %v2668_v17, %v2668_v17  ;;  %v2678_v4 = vmul.f32 %v2674_v30, %v4604_v58  ;;  %v2708_v15 = vsub.f32 %v2652_v48, %v2668_v17 }
 0x880   : > { %v2682_v23 = vsub.f32 %v2678_v4, %v2680_v59 }
 0x882   : > { %v2684_v54 = vmax.f32 %v2682_v23, 0.0 }
 0x883   : > { %v2667_v55 = vpop.xlane.xlu0 %2666 }
 0x884   : > { %v2686_v49 = vadd.f32 1e-05, %v2684_v54  ;;  %v2669_v35 = vmul.f32 %v2667_v55, %v4604_v58 }
 0x885   : > { %v2677_v16 = vpop.xlane.xlu1 %2676 }
 0x886   : > { %3357 = vrsqrt.f32 %v2686_v49  ;;  %v2681_v28 = vmul.f32 %v2669_v35, %v2669_v35  ;;  %v2679_v7 = vmul.f32 %v2677_v16, %v4604_v58  ;;  %vm2694_vm7 = vweird.f32 %v2686_v49 }
 0x887   : > { %v2709_v6 = vsub.f32 %v2653_v13, %v2669_v35 }
 0x888   : > { %v2683_v63 = vsub.f32 %v2679_v7, %v2681_v28 }
 0x88a   : > { %v2685_v61 = vmax.f32 %v2683_v63, 0.0 }
 0x88c   : > { %v3358_v29 = vpop.eup %3357  ;;  %v2687_v50 = vadd.f32 1e-05, %v2685_v61 }
 0x88d   : > { %v2689_v34 = vmul.f32 %v3358_v29, %v2686_v49  ;;  %vm2695_vm6 = vweird.f32 %v3358_v29 }
 0x88e   : > { %3359 = vrsqrt.f32 %v2687_v50  ;;  %vm2696_vm8 = vmor %vm2694_vm7, %vm2695_vm6  ;;  %vm2704_vm11 = vweird.f32 %v2687_v50 }
 0x88f   : > { %v2690_v26 = vmul.f32 %v3358_v29, %v2689_v34 }
 0x891   : > { %v2691_v45 = vmul.f32 0.5, %v2690_v26 }
 0x893   : > { %v2692_v36 = vsub.f32 1.5, %v2691_v45 }
 0x894   : > { %v3360_v20 = vpop.eup %3359 }
 0x895   : > { %v2699_v46 = vmul.f32 %v3360_v20, %v2687_v50  ;;  %v2693_v51 = vmul.f32 %v3358_v29, %v2692_v36  ;;  %vm2705_vm10 = vweird.f32 %v3360_v20 }
 0x896   : > { %vm2706_vm12 = vmor %vm2704_vm11, %vm2705_vm10 }
 0x897   : > { %v2700_v41 = vmul.f32 %v3360_v20, %v2699_v46  ;;  %v2697_v32 = vsel %vm2696_vm8, %v3358_v29, %v2693_v51 }
 0x898   : > { %v2710_v10 = vmul.f32 %v2708_v15, %v2697_v32 }
 0x899   : > { %v2701_v8 = vmul.f32 0.5, %v2700_v41 }
 0x89a   : > { %v2715_v44 = vmul.f32 %v3354_v37, %v2710_v10 }
 0x89b   : > { %v2702_v5 = vsub.f32 1.5, %v2701_v8 }
 0x89c   : > { %v2720_v2 = vadd.f32 %v3355_v53, %v2715_v44 }
 0x89d   : > { %v2703_v24 = vmul.f32 %v3360_v20, %v2702_v5 }
 0x89f   : > { %v2707_v0 = vsel %vm2706_vm12, %v3360_v20, %v2703_v24 }
 0x8a0   : > { %v2711_v60 = vmul.f32 %v2709_v6, %v2707_v0 }
 0x8a2   : > { %v2716_v43 = vmul.f32 %v3354_v37, %v2711_v60 }
 0x8a4   : > { %v2721_v39 = vadd.f32 %v3355_v53, %v2716_v43 }
 0x8a6   : > { %v2722_v56 = vpack.c.bf16 %v2721_v39, %v2720_v2 }
 0x8a8   : > { %3187 = vmatmul.msk.bf16.vlgmr.msra.gmra.mxu0 %vm981_vm1, %v2722_v56 }
 0x925   : > { %v2755_v19 = vpop.f32.mrf.mxu0 }
 0x926   : > { %v2756_v1 = vadd.f32 %v3356_v62, %v2755_v19 }
 0x928   : > { %2760 = vst [vmem:[#allocation3] sm:$0xff] %v2756_v1 }
 0x92d   : > { %v2757_v9 = vpop.f32.mrf.mxu0 }
 0x92e   : > { %v2758_v33 = vadd.f32 %v3356_v62, %v2757_v9 }
 0x930   : > { %2761 = vst [vmem:[#allocation3 + $0x8] sm:$0xff] %v2758_v33 }
 0x931 PF: > { %s4609_s0 = sld [smem:[#allocation7_spill]]  ;;  %s3428_s28 = smov [#allocation3]  }
 0x932   : > { %s4611_s5 = sld [smem:[#allocation28_spill]]  ;;  %s2770_s3 = sshll.u32 %s3428_s28, 4  ;;  %s2771_s3 = int_to_ptr.vmem [resolvable:$true] %s2770_s3 }
 0x933   : > { %s3429_s9 = smov 128  }
 0x937   : > { %s4610_s17 = sadd.s32 4294967295, %s4609_s0  }
 0x938   : > { %p3241_p7 = scmp.eq.s32.totalorder %s4610_s17, 1  ;;  %s2772_s2 = sshll.u32 %s4611_s5, 4  ;;  %s2773_s2 = int_to_ptr.hbm [resolvable:$true] %s2772_s2 }
 0x93a   : > { %3238 = dma.vmem_to_hbm [thread:$0]  (%p3241_p7), %s2771_s3, 256, %s2773_s2, [#allocation4], %s3429_s9, %s3429_s9, %s3425_s23  }
 0x93b   : > { %3402 = dma.done.wait (%p3241_p7), [#allocation4], 256  }
 0x93c   : > { %3404 = vsyncadd (%p3241_p7), [#allocation4], 4294967040 }
 0x93d PF: > { %s4612_s20 = sld [smem:[#allocation7_spill]] }
 0x93e   : > { %s4613_s2 = sld [smem:[#allocation6_spill]] }
 0x93f   : > { %s4614_s25 = sld [smem:[#allocation8_spill]] }
 0x943   : > { %s32_s26 = sadd.s32 1, %s4612_s20  }
 0x944   : > { %p29_p8 = scmp.ge.s32.totalorder %s32_s26, 4  }
 0x946   :  { %31 = sbr.rel (!%p29_p8) target bundleno = 17 (0x11), region = 188 }
 0x94b   :  { %2789 = vsyncpa [#allocation4], 1 }
 0x94c   :  { %2791 = vsyncpa [#allocation4 + $0x1], 1 }

</bundles_post_ra>
